<compile_context>
chip_gen: v5e
topology: v5e:2x2
jax: 0.10.0
libtpu: 0.0.40
codegen_flags: <defaults>
</compile_context>

<pallas_src>
import jax
import jax.numpy as jnp
from jax.experimental import pallas as pl
from jax.experimental.pallas import tpu as pltpu


def _make_sample_keys(rng, B, P):
    """Per-anchor nonnegative int32 keys, unique within each sample.

    High (31 - idx_bits) bits are random, low idx_bits bits are the anchor index
    (deterministic tie break), so "the 3*num_pos smallest keys among negatives" is an
    exact sample-without-replacement of the negatives.
    """
    idx_bits = max(1, (P - 1).bit_length())
    rbits = jax.random.bits(rng, (B, P), dtype=jnp.uint32)
    idx = jnp.arange(P, dtype=jnp.uint32)[None, :]
    keys_u = ((rbits >> jnp.uint32(idx_bits + 1)) << jnp.uint32(idx_bits)) | idx
    return keys_u.astype(jnp.int32)          # values in [0, 2**31)


def _arm_box_loss_kernel(loc_t_ref, loc_p_ref, conf_t_ref, conf_ref, key_ref,
                         loc_out_ref, cls_out_ref, npos_out_ref):
    TB = conf_t_ref.shape[0]

    labels = conf_t_ref[...]                              # (TB, 1, P) i32
    pos = labels > 0                                      # (TB, 1, P)
    posf = pos.astype(jnp.float32)
    is_neg = jnp.logical_not(pos)                         # conf_t == 0 or == -1

    # ---- localization: smooth L1 (beta=1), summed over positive anchors ------------
    d = loc_p_ref[...] - loc_t_ref[...]                   # (TB, 4, P)
    ad = jnp.abs(d)
    sl1 = jnp.where(ad < 1.0, 0.5 * d * d, ad - 0.5)
    loc_sum = jnp.sum(sl1 * posf)                         # posf broadcasts over the 4 coords

    # ---- classification CE, specialized to C == 2: ce = softplus(l_other - l_label) --
    diff01 = conf_ref[:, 0:1, :] - conf_ref[:, 1:2, :]    # (TB, 1, P) = l0 - l1
    z = jnp.where(pos, diff01, -diff01)
    ce = jnp.maximum(z, 0.0) + jnp.log(1.0 + jnp.exp(-jnp.abs(z)))   # stable softplus

    # ---- random negative sampling: min(3*num_pos, n_neg) negatives without replacement
    pos_num = jnp.sum(pos.astype(jnp.int32), axis=2, keepdims=True)      # (TB, 1, 1)
    n_neg = jnp.sum(is_neg.astype(jnp.int32), axis=2, keepdims=True)     # (TB, 1, 1)
    want = jnp.minimum(3 * pos_num, n_neg)                               # (TB, 1, 1)

    keys = key_ref[...]                                                  # (TB, 1, P)
    sentinel = jnp.int32(2**31 - 1)
    neg_keys = jnp.where(is_neg, keys, sentinel)          # positives never count as "< cand"

    # Bitwise binary search for the `want`-th smallest negative key (keys unique, < 2**31).
    thresh = jnp.zeros((TB, 1, 1), dtype=jnp.int32)
    for bit in range(30, -1, -1):
        cand = thresh + jnp.int32(1 << bit)                              # (TB, 1, 1)
        cnt = jnp.sum((neg_keys < cand).astype(jnp.int32), axis=2, keepdims=True)
        thresh = jnp.where(cnt < want, cand, thresh)

    sel_neg = jnp.logical_and(jnp.logical_and(is_neg, neg_keys <= thresh), want > 0)
    weight = jnp.logical_or(pos, sel_neg).astype(jnp.float32)            # (TB, 1, P)
    cls_sum = jnp.sum(ce * weight)

    # Per-block partial sums (final tiny reduction over blocks happens in the wrapper).
    loc_out_ref[...] = jnp.broadcast_to(loc_sum, (1, 1, 1))
    cls_out_ref[...] = jnp.broadcast_to(cls_sum, (1, 1, 1))
    npos_out_ref[...] = jnp.broadcast_to(jnp.sum(posf), (1, 1, 1))


def arm_box_loss(loc_t, loc_data, conf_t, conf_data, rng_key=None, block_batch=8):
    B, P, four = loc_data.shape
    C = conf_data.shape[-1]
    assert four == 4
    # TODO(synk): cross entropy is specialized to num_classes == 2 (the module default);
    # general C would need a log-sum-exp over the class axis.
    assert C == 2
    if rng_key is None:
        rng_key = jax.random.PRNGKey(0)

    # Lane-dense layout: anchors P on the 128-lane axis.
    loc_t_l = jnp.transpose(loc_t.astype(jnp.float32), (0, 2, 1))       # (B, 4, P)
    loc_p_l = jnp.transpose(loc_data.astype(jnp.float32), (0, 2, 1))    # (B, 4, P)
    conf_l = jnp.transpose(conf_data.astype(jnp.float32), (0, 2, 1))    # (B, C, P)
    conf_t_l = conf_t.astype(jnp.int32).reshape(B, 1, P)                # (B, 1, P)
    keys_l = _make_sample_keys(rng_key, B, P).reshape(B, 1, P)          # (B, 1, P)

    # Several samples per grid step (largest divisor of B that is <= block_batch).
    TB = max(d for d in range(1, min(B, block_batch) + 1) if B % d == 0)
    nb = B // TB

    grid_spec = pltpu.PrefetchScalarGridSpec(
        num_scalar_prefetch=0,
        grid=(nb,),
        in_specs=[
            pl.BlockSpec((TB, 4, P), lambda b: (b, 0, 0)),   # loc_t
            pl.BlockSpec((TB, 4, P), lambda b: (b, 0, 0)),   # loc_data
            pl.BlockSpec((TB, 1, P), lambda b: (b, 0, 0)),   # conf_t
            pl.BlockSpec((TB, C, P), lambda b: (b, 0, 0)),   # conf_data
            pl.BlockSpec((TB, 1, P), lambda b: (b, 0, 0)),   # sampling keys
        ],
        out_specs=[
            pl.BlockSpec((1, 1, 1), lambda b: (b, 0, 0)),    # per-block loc sum
            pl.BlockSpec((1, 1, 1), lambda b: (b, 0, 0)),    # per-block cls sum
            pl.BlockSpec((1, 1, 1), lambda b: (b, 0, 0)),    # per-block num_pos
        ],
    )

    loc_part, cls_part, npos_part = pl.pallas_call(
        _arm_box_loss_kernel,
        out_shape=(
            jax.ShapeDtypeStruct((nb, 1, 1), jnp.float32),
            jax.ShapeDtypeStruct((nb, 1, 1), jnp.float32),
            jax.ShapeDtypeStruct((nb, 1, 1), jnp.float32),
        ),
        grid_spec=grid_spec,
        compiler_params=pltpu.CompilerParams(
            dimension_semantics=("parallel",)),   # each block writes its own outputs
    )(loc_t_l, loc_p_l, conf_t_l, conf_l, keys_l)

    # Tiny glue reduction + normalization, matching the torch code (including /N with no
    # guard against N == 0 — same behavior as the reference module).
    N = jnp.sum(npos_part)
    loss_l = jnp.sum(loc_part) / N
    loss_c = jnp.sum(cls_part) / N
    return loss_l, loss_c


def _ref_arm_box_loss(loc_t, loc_data, conf_t, conf_data, keys):
    """Pure-JAX reference using the same per-anchor random keys."""
    pos = conf_t > 0                                           # (B, P)
    N = jnp.sum(pos).astype(jnp.float32)

    d = loc_data.astype(jnp.float32) - loc_t.astype(jnp.float32)
    ad = jnp.abs(d)
    sl1 = jnp.where(ad < 1.0, 0.5 * d * d, ad - 0.5)
    loss_l = jnp.sum(sl1 * pos[..., None].astype(jnp.float32)) / N

    logits = conf_data.astype(jnp.float32)                     # (B, P, 2)
    lse = jax.nn.logsumexp(logits, axis=-1)
    picked = jnp.where(pos, logits[..., 1], logits[..., 0])
    ce = lse - picked                                          # (B, P)

    is_neg = jnp.logical_not(pos)
    pos_num = jnp.sum(pos, axis=1)                             # (B,)
    n_neg = jnp.sum(is_neg, axis=1)
    want = jnp.minimum(3 * pos_num, n_neg)
    masked = jnp.where(is_neg, keys, jnp.int32(2**31 - 1))
    rank = jnp.argsort(jnp.argsort(masked, axis=1), axis=1)    # ascending rank of each key
    sel = jnp.logical_and(is_neg, rank < want[:, None])
    weight = jnp.logical_or(pos, sel).astype(jnp.float32)
    loss_c = jnp.sum(ce * weight) / N
    return loss_l, loss_c


if __name__ == "__main__":
    # Small synthetic shapes: batch=2, anchors=128, 4 box coords, num_classes=2.
    B, P, C = 2, 128, 2
    key = jax.random.PRNGKey(0)
    k1, k2, k3, k4, k5 = jax.random.split(key, 5)

    loc_t = jax.random.normal(k1, (B, P, 4), dtype=jnp.float32)
    loc_data = jax.random.normal(k2, (B, P, 4), dtype=jnp.float32)
    # labels in {-1, 0, 1}: -1 = ignore -> background, 0 = background, 1 = object
    conf_t = jax.random.randint(k3, (B, P), minval=-1, maxval=2, dtype=jnp.int32)
    conf_data = jax.random.normal(k4, (B, P, C), dtype=jnp.float32)

    loss_l, loss_c = arm_box_loss(loc_t, loc_data, conf_t, conf_data, rng_key=k5)
    loss_l, loss_c = jax.block_until_ready((loss_l, loss_c))

    # Correctness: both branches match a pure-JAX reference that uses the same random keys.
    keys = _make_sample_keys(k5, B, P)
    ref_l, ref_c = _ref_arm_box_loss(loc_t, loc_data, conf_t, conf_data, keys)
    assert jnp.allclose(loss_l, ref_l, rtol=1e-5, atol=1e-5), (float(loss_l), float(ref_l))
    assert jnp.allclose(loss_c, ref_c, rtol=1e-4, atol=1e-4), (float(loss_c), float(ref_c))
    assert bool(jnp.isfinite(loss_c)) and float(loss_c) >= 0.0

    # TODO(synk): torch.randperm negative sampling is reproduced with a jax.random key
    # stream (same "sample 3*num_pos negatives without replacement" semantics, different
    # random stream than torch's RNG).
    print("KERNEL_OK")
</pallas_src>

<mosaic_0001>
module attributes {stable_mosaic.version = 11 : i64} {
  func.func @_arm_box_loss_kernel(%arg0: i32, %arg1: memref<2x4x128xf32, #tpu.memory_space<vmem>>, %arg2: memref<2x4x128xf32, #tpu.memory_space<vmem>>, %arg3: memref<2x1x128xi32, #tpu.memory_space<vmem>>, %arg4: memref<2x2x128xf32, #tpu.memory_space<vmem>>, %arg5: memref<2x1x128xi32, #tpu.memory_space<vmem>>, %arg6: memref<1x1x1xf32, #tpu.memory_space<vmem>>, %arg7: memref<1x1x1xf32, #tpu.memory_space<vmem>>, %arg8: memref<1x1x1xf32, #tpu.memory_space<vmem>>) attributes {dimension_semantics = [#tpu.dimension_semantics<parallel>], iteration_bounds = array<i64: 1>, scalar_prefetch = 0 : i64, scratch_operands = 0 : i64, tpu.core_type = #tpu.core_type<tc>, window_params = [{transform_indices = @transform_0, window_bounds = array<i64: 2, 4, 128>}, {transform_indices = @transform_1, window_bounds = array<i64: 2, 4, 128>}, {transform_indices = @transform_2, window_bounds = array<i64: 2, 1, 128>}, {transform_indices = @transform_3, window_bounds = array<i64: 2, 2, 128>}, {transform_indices = @transform_4, window_bounds = array<i64: 2, 1, 128>}, {transform_indices = @transform_5, window_bounds = array<i64: 1, 1, 1>}, {transform_indices = @transform_6, window_bounds = array<i64: 1, 1, 1>}, {transform_indices = @transform_7, window_bounds = array<i64: 1, 1, 1>}]} {
    %c0 = arith.constant 0 : index
    %c0_0 = arith.constant 0 : index
    %c0_1 = arith.constant 0 : index
    %0 = vector.load %arg3[%c0, %c0_0, %c0_1] : memref<2x1x128xi32, #tpu.memory_space<vmem>>, vector<2x1x128xi32>
    %c0_i32 = arith.constant 0 : i32
    %1 = vector.broadcast %c0_i32 : i32 to vector<2x1x128xi32>
    %2 = arith.cmpi sgt, %0, %1 : vector<2x1x128xi32>
    %3 = arith.extui %2 : vector<2x1x128xi1> to vector<2x1x128xi32>
    %4 = arith.sitofp %3 : vector<2x1x128xi32> to vector<2x1x128xf32>
    %cst = arith.constant dense<true> : vector<2x1x128xi1>
    %5 = arith.xori %2, %cst : vector<2x1x128xi1>
    %c0_2 = arith.constant 0 : index
    %c0_3 = arith.constant 0 : index
    %c0_4 = arith.constant 0 : index
    %6 = vector.load %arg2[%c0_2, %c0_3, %c0_4] : memref<2x4x128xf32, #tpu.memory_space<vmem>>, vector<2x4x128xf32>
    %c0_5 = arith.constant 0 : index
    %c0_6 = arith.constant 0 : index
    %c0_7 = arith.constant 0 : index
    %7 = vector.load %arg1[%c0_5, %c0_6, %c0_7] : memref<2x4x128xf32, #tpu.memory_space<vmem>>, vector<2x4x128xf32>
    %8 = arith.subf %6, %7 : vector<2x4x128xf32>
    %9 = math.absf %8 : vector<2x4x128xf32>
    %cst_8 = arith.constant 1.000000e+00 : f32
    %10 = vector.broadcast %cst_8 : f32 to vector<2x4x128xf32>
    %11 = arith.cmpf olt, %9, %10 : vector<2x4x128xf32>
    %cst_9 = arith.constant 5.000000e-01 : f32
    %12 = vector.broadcast %cst_9 : f32 to vector<2x4x128xf32>
    %13 = arith.mulf %12, %8 : vector<2x4x128xf32>
    %14 = arith.mulf %13, %8 : vector<2x4x128xf32>
    %cst_10 = arith.constant 5.000000e-01 : f32
    %15 = vector.broadcast %cst_10 : f32 to vector<2x4x128xf32>
    %16 = arith.subf %9, %15 : vector<2x4x128xf32>
    %17 = arith.select %11, %14, %16 : vector<2x4x128xi1>, vector<2x4x128xf32>
    %18 = vector.broadcast %4 : vector<2x1x128xf32> to vector<2x4x128xf32>
    %19 = arith.mulf %17, %18 : vector<2x4x128xf32>
    %20 = vector.shape_cast %19 : vector<2x4x128xf32> to vector<1x2x4x128xf32>
    %cst_11 = arith.constant dense<0.000000e+00> : vector<1xf32>
    %21 = vector.multi_reduction <add>, %20, %cst_11 [1, 2, 3] : vector<1x2x4x128xf32> to vector<1xf32>
    %22 = vector.shape_cast %21 : vector<1xf32> to vector<1x1x1x1xf32>
    %23 = vector.extract %22[0, 0, 0, 0] : f32 from vector<1x1x1x1xf32>
    %c0_12 = arith.constant 0 : index
    %c0_13 = arith.constant 0 : index
    %c0_14 = arith.constant 0 : index
    %24 = vector.load %arg4[%c0_12, %c0_13, %c0_14] : memref<2x2x128xf32, #tpu.memory_space<vmem>>, vector<2x1x128xf32>
    %c0_15 = arith.constant 0 : index
    %c1 = arith.constant 1 : index
    %c0_16 = arith.constant 0 : index
    %25 = vector.load %arg4[%c0_15, %c1, %c0_16] : memref<2x2x128xf32, #tpu.memory_space<vmem>>, vector<2x1x128xf32>
    %26 = arith.subf %24, %25 : vector<2x1x128xf32>
    %cst_17 = arith.constant 0.000000e+00 : f32
    %27 = vector.broadcast %cst_17 : f32 to vector<2x1x128xf32>
    %28 = arith.subf %27, %26 : vector<2x1x128xf32>
    %29 = arith.select %2, %26, %28 : vector<2x1x128xi1>, vector<2x1x128xf32>
    %cst_18 = arith.constant 0.000000e+00 : f32
    %30 = vector.broadcast %cst_18 : f32 to vector<2x1x128xf32>
    %31 = arith.maximumf %29, %30 : vector<2x1x128xf32>
    %32 = math.absf %29 : vector<2x1x128xf32>
    %cst_19 = arith.constant 0.000000e+00 : f32
    %33 = vector.broadcast %cst_19 : f32 to vector<2x1x128xf32>
    %34 = arith.subf %33, %32 : vector<2x1x128xf32>
    %35 = math.exp %34 : vector<2x1x128xf32>
    %cst_20 = arith.constant 1.000000e+00 : f32
    %36 = vector.broadcast %cst_20 : f32 to vector<2x1x128xf32>
    %37 = arith.addf %36, %35 : vector<2x1x128xf32>
    %38 = math.log %37 : vector<2x1x128xf32>
    %39 = arith.addf %31, %38 : vector<2x1x128xf32>
    %40 = arith.extui %2 : vector<2x1x128xi1> to vector<2x1x128xi32>
    %cst_21 = arith.constant dense<0> : vector<2x1xi32>
    %41 = vector.multi_reduction <add>, %40, %cst_21 [2] : vector<2x1x128xi32> to vector<2x1xi32>
    %42 = vector.shape_cast %41 : vector<2x1xi32> to vector<2x1x1xi32>
    %43 = arith.extui %5 : vector<2x1x128xi1> to vector<2x1x128xi32>
    %cst_22 = arith.constant dense<0> : vector<2x1xi32>
    %44 = vector.multi_reduction <add>, %43, %cst_22 [2] : vector<2x1x128xi32> to vector<2x1xi32>
    %45 = vector.shape_cast %44 : vector<2x1xi32> to vector<2x1x1xi32>
    %c3_i32 = arith.constant 3 : i32
    %46 = vector.broadcast %c3_i32 : i32 to vector<2x1x1xi32>
    %47 = arith.muli %46, %42 : vector<2x1x1xi32>
    %48 = arith.minsi %47, %45 : vector<2x1x1xi32>
    %c0_23 = arith.constant 0 : index
    %c0_24 = arith.constant 0 : index
    %c0_25 = arith.constant 0 : index
    %49 = vector.load %arg5[%c0_23, %c0_24, %c0_25] : memref<2x1x128xi32, #tpu.memory_space<vmem>>, vector<2x1x128xi32>
    %c2147483647_i32 = arith.constant 2147483647 : i32
    %50 = vector.broadcast %c2147483647_i32 : i32 to vector<2x1x128xi32>
    %51 = arith.select %5, %49, %50 : vector<2x1x128xi1>, vector<2x1x128xi32>
    %c0_i32_26 = arith.constant 0 : i32
    %52 = vector.broadcast %c0_i32_26 : i32 to vector<2x1x1xi32>
    %c1073741824_i32 = arith.constant 1073741824 : i32
    %53 = vector.broadcast %c1073741824_i32 : i32 to vector<2x1x1xi32>
    %54 = arith.addi %52, %53 : vector<2x1x1xi32>
    %55 = vector.broadcast %54 : vector<2x1x1xi32> to vector<2x1x128xi32>
    %56 = arith.cmpi slt, %51, %55 : vector<2x1x128xi32>
    %57 = arith.extui %56 : vector<2x1x128xi1> to vector<2x1x128xi32>
    %cst_27 = arith.constant dense<0> : vector<2x1xi32>
    %58 = vector.multi_reduction <add>, %57, %cst_27 [2] : vector<2x1x128xi32> to vector<2x1xi32>
    %59 = vector.shape_cast %58 : vector<2x1xi32> to vector<2x1x1xi32>
    %60 = arith.cmpi slt, %59, %48 : vector<2x1x1xi32>
    %61 = arith.select %60, %54, %52 : vector<2x1x1xi1>, vector<2x1x1xi32>
    %c536870912_i32 = arith.constant 536870912 : i32
    %62 = vector.broadcast %c536870912_i32 : i32 to vector<2x1x1xi32>
    %63 = arith.addi %61, %62 : vector<2x1x1xi32>
    %64 = vector.broadcast %63 : vector<2x1x1xi32> to vector<2x1x128xi32>
    %65 = arith.cmpi slt, %51, %64 : vector<2x1x128xi32>
    %66 = arith.extui %65 : vector<2x1x128xi1> to vector<2x1x128xi32>
    %cst_28 = arith.constant dense<0> : vector<2x1xi32>
    %67 = vector.multi_reduction <add>, %66, %cst_28 [2] : vector<2x1x128xi32> to vector<2x1xi32>
    %68 = vector.shape_cast %67 : vector<2x1xi32> to vector<2x1x1xi32>
    %69 = arith.cmpi slt, %68, %48 : vector<2x1x1xi32>
    %70 = arith.select %69, %63, %61 : vector<2x1x1xi1>, vector<2x1x1xi32>
    %c268435456_i32 = arith.constant 268435456 : i32
    %71 = vector.broadcast %c268435456_i32 : i32 to vector<2x1x1xi32>
    %72 = arith.addi %70, %71 : vector<2x1x1xi32>
    %73 = vector.broadcast %72 : vector<2x1x1xi32> to vector<2x1x128xi32>
    %74 = arith.cmpi slt, %51, %73 : vector<2x1x128xi32>
    %75 = arith.extui %74 : vector<2x1x128xi1> to vector<2x1x128xi32>
    %cst_29 = arith.constant dense<0> : vector<2x1xi32>
    %76 = vector.multi_reduction <add>, %75, %cst_29 [2] : vector<2x1x128xi32> to vector<2x1xi32>
    %77 = vector.shape_cast %76 : vector<2x1xi32> to vector<2x1x1xi32>
    %78 = arith.cmpi slt, %77, %48 : vector<2x1x1xi32>
    %79 = arith.select %78, %72, %70 : vector<2x1x1xi1>, vector<2x1x1xi32>
    %c134217728_i32 = arith.constant 134217728 : i32
    %80 = vector.broadcast %c134217728_i32 : i32 to vector<2x1x1xi32>
    %81 = arith.addi %79, %80 : vector<2x1x1xi32>
    %82 = vector.broadcast %81 : vector<2x1x1xi32> to vector<2x1x128xi32>
    %83 = arith.cmpi slt, %51, %82 : vector<2x1x128xi32>
    %84 = arith.extui %83 : vector<2x1x128xi1> to vector<2x1x128xi32>
    %cst_30 = arith.constant dense<0> : vector<2x1xi32>
    %85 = vector.multi_reduction <add>, %84, %cst_30 [2] : vector<2x1x128xi32> to vector<2x1xi32>
    %86 = vector.shape_cast %85 : vector<2x1xi32> to vector<2x1x1xi32>
    %87 = arith.cmpi slt, %86, %48 : vector<2x1x1xi32>
    %88 = arith.select %87, %81, %79 : vector<2x1x1xi1>, vector<2x1x1xi32>
    %c67108864_i32 = arith.constant 67108864 : i32
    %89 = vector.broadcast %c67108864_i32 : i32 to vector<2x1x1xi32>
    %90 = arith.addi %88, %89 : vector<2x1x1xi32>
    %91 = vector.broadcast %90 : vector<2x1x1xi32> to vector<2x1x128xi32>
    %92 = arith.cmpi slt, %51, %91 : vector<2x1x128xi32>
    %93 = arith.extui %92 : vector<2x1x128xi1> to vector<2x1x128xi32>
    %cst_31 = arith.constant dense<0> : vector<2x1xi32>
    %94 = vector.multi_reduction <add>, %93, %cst_31 [2] : vector<2x1x128xi32> to vector<2x1xi32>
    %95 = vector.shape_cast %94 : vector<2x1xi32> to vector<2x1x1xi32>
    %96 = arith.cmpi slt, %95, %48 : vector<2x1x1xi32>
    %97 = arith.select %96, %90, %88 : vector<2x1x1xi1>, vector<2x1x1xi32>
    %c33554432_i32 = arith.constant 33554432 : i32
    %98 = vector.broadcast %c33554432_i32 : i32 to vector<2x1x1xi32>
    %99 = arith.addi %97, %98 : vector<2x1x1xi32>
    %100 = vector.broadcast %99 : vector<2x1x1xi32> to vector<2x1x128xi32>
    %101 = arith.cmpi slt, %51, %100 : vector<2x1x128xi32>
    %102 = arith.extui %101 : vector<2x1x128xi1> to vector<2x1x128xi32>
    %cst_32 = arith.constant dense<0> : vector<2x1xi32>
    %103 = vector.multi_reduction <add>, %102, %cst_32 [2] : vector<2x1x128xi32> to vector<2x1xi32>
    %104 = vector.shape_cast %103 : vector<2x1xi32> to vector<2x1x1xi32>
    %105 = arith.cmpi slt, %104, %48 : vector<2x1x1xi32>
    %106 = arith.select %105, %99, %97 : vector<2x1x1xi1>, vector<2x1x1xi32>
    %c16777216_i32 = arith.constant 16777216 : i32
    %107 = vector.broadcast %c16777216_i32 : i32 to vector<2x1x1xi32>
    %108 = arith.addi %106, %107 : vector<2x1x1xi32>
    %109 = vector.broadcast %108 : vector<2x1x1xi32> to vector<2x1x128xi32>
    %110 = arith.cmpi slt, %51, %109 : vector<2x1x128xi32>
    %111 = arith.extui %110 : vector<2x1x128xi1> to vector<2x1x128xi32>
    %cst_33 = arith.constant dense<0> : vector<2x1xi32>
    %112 = vector.multi_reduction <add>, %111, %cst_33 [2] : vector<2x1x128xi32> to vector<2x1xi32>
    %113 = vector.shape_cast %112 : vector<2x1xi32> to vector<2x1x1xi32>
    %114 = arith.cmpi slt, %113, %48 : vector<2x1x1xi32>
    %115 = arith.select %114, %108, %106 : vector<2x1x1xi1>, vector<2x1x1xi32>
    %c8388608_i32 = arith.constant 8388608 : i32
    %116 = vector.broadcast %c8388608_i32 : i32 to vector<2x1x1xi32>
    %117 = arith.addi %115, %116 : vector<2x1x1xi32>
    %118 = vector.broadcast %117 : vector<2x1x1xi32> to vector<2x1x128xi32>
    %119 = arith.cmpi slt, %51, %118 : vector<2x1x128xi32>
    %120 = arith.extui %119 : vector<2x1x128xi1> to vector<2x1x128xi32>
    %cst_34 = arith.constant dense<0> : vector<2x1xi32>
    %121 = vector.multi_reduction <add>, %120, %cst_34 [2] : vector<2x1x128xi32> to vector<2x1xi32>
    %122 = vector.shape_cast %121 : vector<2x1xi32> to vector<2x1x1xi32>
    %123 = arith.cmpi slt, %122, %48 : vector<2x1x1xi32>
    %124 = arith.select %123, %117, %115 : vector<2x1x1xi1>, vector<2x1x1xi32>
    %c4194304_i32 = arith.constant 4194304 : i32
    %125 = vector.broadcast %c4194304_i32 : i32 to vector<2x1x1xi32>
    %126 = arith.addi %124, %125 : vector<2x1x1xi32>
    %127 = vector.broadcast %126 : vector<2x1x1xi32> to vector<2x1x128xi32>
    %128 = arith.cmpi slt, %51, %127 : vector<2x1x128xi32>
    %129 = arith.extui %128 : vector<2x1x128xi1> to vector<2x1x128xi32>
    %cst_35 = arith.constant dense<0> : vector<2x1xi32>
    %130 = vector.multi_reduction <add>, %129, %cst_35 [2] : vector<2x1x128xi32> to vector<2x1xi32>
    %131 = vector.shape_cast %130 : vector<2x1xi32> to vector<2x1x1xi32>
    %132 = arith.cmpi slt, %131, %48 : vector<2x1x1xi32>
    %133 = arith.select %132, %126, %124 : vector<2x1x1xi1>, vector<2x1x1xi32>
    %c2097152_i32 = arith.constant 2097152 : i32
    %134 = vector.broadcast %c2097152_i32 : i32 to vector<2x1x1xi32>
    %135 = arith.addi %133, %134 : vector<2x1x1xi32>
    %136 = vector.broadcast %135 : vector<2x1x1xi32> to vector<2x1x128xi32>
    %137 = arith.cmpi slt, %51, %136 : vector<2x1x128xi32>
    %138 = arith.extui %137 : vector<2x1x128xi1> to vector<2x1x128xi32>
    %cst_36 = arith.constant dense<0> : vector<2x1xi32>
    %139 = vector.multi_reduction <add>, %138, %cst_36 [2] : vector<2x1x128xi32> to vector<2x1xi32>
    %140 = vector.shape_cast %139 : vector<2x1xi32> to vector<2x1x1xi32>
    %141 = arith.cmpi slt, %140, %48 : vector<2x1x1xi32>
    %142 = arith.select %141, %135, %133 : vector<2x1x1xi1>, vector<2x1x1xi32>
    %c1048576_i32 = arith.constant 1048576 : i32
    %143 = vector.broadcast %c1048576_i32 : i32 to vector<2x1x1xi32>
    %144 = arith.addi %142, %143 : vector<2x1x1xi32>
    %145 = vector.broadcast %144 : vector<2x1x1xi32> to vector<2x1x128xi32>
    %146 = arith.cmpi slt, %51, %145 : vector<2x1x128xi32>
    %147 = arith.extui %146 : vector<2x1x128xi1> to vector<2x1x128xi32>
    %cst_37 = arith.constant dense<0> : vector<2x1xi32>
    %148 = vector.multi_reduction <add>, %147, %cst_37 [2] : vector<2x1x128xi32> to vector<2x1xi32>
    %149 = vector.shape_cast %148 : vector<2x1xi32> to vector<2x1x1xi32>
    %150 = arith.cmpi slt, %149, %48 : vector<2x1x1xi32>
    %151 = arith.select %150, %144, %142 : vector<2x1x1xi1>, vector<2x1x1xi32>
    %c524288_i32 = arith.constant 524288 : i32
    %152 = vector.broadcast %c524288_i32 : i32 to vector<2x1x1xi32>
    %153 = arith.addi %151, %152 : vector<2x1x1xi32>
    %154 = vector.broadcast %153 : vector<2x1x1xi32> to vector<2x1x128xi32>
    %155 = arith.cmpi slt, %51, %154 : vector<2x1x128xi32>
    %156 = arith.extui %155 : vector<2x1x128xi1> to vector<2x1x128xi32>
    %cst_38 = arith.constant dense<0> : vector<2x1xi32>
    %157 = vector.multi_reduction <add>, %156, %cst_38 [2] : vector<2x1x128xi32> to vector<2x1xi32>
    %158 = vector.shape_cast %157 : vector<2x1xi32> to vector<2x1x1xi32>
    %159 = arith.cmpi slt, %158, %48 : vector<2x1x1xi32>
    %160 = arith.select %159, %153, %151 : vector<2x1x1xi1>, vector<2x1x1xi32>
    %c262144_i32 = arith.constant 262144 : i32
    %161 = vector.broadcast %c262144_i32 : i32 to vector<2x1x1xi32>
    %162 = arith.addi %160, %161 : vector<2x1x1xi32>
    %163 = vector.broadcast %162 : vector<2x1x1xi32> to vector<2x1x128xi32>
    %164 = arith.cmpi slt, %51, %163 : vector<2x1x128xi32>
    %165 = arith.extui %164 : vector<2x1x128xi1> to vector<2x1x128xi32>
    %cst_39 = arith.constant dense<0> : vector<2x1xi32>
    %166 = vector.multi_reduction <add>, %165, %cst_39 [2] : vector<2x1x128xi32> to vector<2x1xi32>
    %167 = vector.shape_cast %166 : vector<2x1xi32> to vector<2x1x1xi32>
    %168 = arith.cmpi slt, %167, %48 : vector<2x1x1xi32>
    %169 = arith.select %168, %162, %160 : vector<2x1x1xi1>, vector<2x1x1xi32>
    %c131072_i32 = arith.constant 131072 : i32
    %170 = vector.broadcast %c131072_i32 : i32 to vector<2x1x1xi32>
    %171 = arith.addi %169, %170 : vector<2x1x1xi32>
    %172 = vector.broadcast %171 : vector<2x1x1xi32> to vector<2x1x128xi32>
    %173 = arith.cmpi slt, %51, %172 : vector<2x1x128xi32>
    %174 = arith.extui %173 : vector<2x1x128xi1> to vector<2x1x128xi32>
    %cst_40 = arith.constant dense<0> : vector<2x1xi32>
    %175 = vector.multi_reduction <add>, %174, %cst_40 [2] : vector<2x1x128xi32> to vector<2x1xi32>
    %176 = vector.shape_cast %175 : vector<2x1xi32> to vector<2x1x1xi32>
    %177 = arith.cmpi slt, %176, %48 : vector<2x1x1xi32>
    %178 = arith.select %177, %171, %169 : vector<2x1x1xi1>, vector<2x1x1xi32>
    %c65536_i32 = arith.constant 65536 : i32
    %179 = vector.broadcast %c65536_i32 : i32 to vector<2x1x1xi32>
    %180 = arith.addi %178, %179 : vector<2x1x1xi32>
    %181 = vector.broadcast %180 : vector<2x1x1xi32> to vector<2x1x128xi32>
    %182 = arith.cmpi slt, %51, %181 : vector<2x1x128xi32>
    %183 = arith.extui %182 : vector<2x1x128xi1> to vector<2x1x128xi32>
    %cst_41 = arith.constant dense<0> : vector<2x1xi32>
    %184 = vector.multi_reduction <add>, %183, %cst_41 [2] : vector<2x1x128xi32> to vector<2x1xi32>
    %185 = vector.shape_cast %184 : vector<2x1xi32> to vector<2x1x1xi32>
    %186 = arith.cmpi slt, %185, %48 : vector<2x1x1xi32>
    %187 = arith.select %186, %180, %178 : vector<2x1x1xi1>, vector<2x1x1xi32>
    %c32768_i32 = arith.constant 32768 : i32
    %188 = vector.broadcast %c32768_i32 : i32 to vector<2x1x1xi32>
    %189 = arith.addi %187, %188 : vector<2x1x1xi32>
    %190 = vector.broadcast %189 : vector<2x1x1xi32> to vector<2x1x128xi32>
    %191 = arith.cmpi slt, %51, %190 : vector<2x1x128xi32>
    %192 = arith.extui %191 : vector<2x1x128xi1> to vector<2x1x128xi32>
    %cst_42 = arith.constant dense<0> : vector<2x1xi32>
    %193 = vector.multi_reduction <add>, %192, %cst_42 [2] : vector<2x1x128xi32> to vector<2x1xi32>
    %194 = vector.shape_cast %193 : vector<2x1xi32> to vector<2x1x1xi32>
    %195 = arith.cmpi slt, %194, %48 : vector<2x1x1xi32>
    %196 = arith.select %195, %189, %187 : vector<2x1x1xi1>, vector<2x1x1xi32>
    %c16384_i32 = arith.constant 16384 : i32
    %197 = vector.broadcast %c16384_i32 : i32 to vector<2x1x1xi32>
    %198 = arith.addi %196, %197 : vector<2x1x1xi32>
    %199 = vector.broadcast %198 : vector<2x1x1xi32> to vector<2x1x128xi32>
    %200 = arith.cmpi slt, %51, %199 : vector<2x1x128xi32>
    %201 = arith.extui %200 : vector<2x1x128xi1> to vector<2x1x128xi32>
    %cst_43 = arith.constant dense<0> : vector<2x1xi32>
    %202 = vector.multi_reduction <add>, %201, %cst_43 [2] : vector<2x1x128xi32> to vector<2x1xi32>
    %203 = vector.shape_cast %202 : vector<2x1xi32> to vector<2x1x1xi32>
    %204 = arith.cmpi slt, %203, %48 : vector<2x1x1xi32>
    %205 = arith.select %204, %198, %196 : vector<2x1x1xi1>, vector<2x1x1xi32>
    %c8192_i32 = arith.constant 8192 : i32
    %206 = vector.broadcast %c8192_i32 : i32 to vector<2x1x1xi32>
    %207 = arith.addi %205, %206 : vector<2x1x1xi32>
    %208 = vector.broadcast %207 : vector<2x1x1xi32> to vector<2x1x128xi32>
    %209 = arith.cmpi slt, %51, %208 : vector<2x1x128xi32>
    %210 = arith.extui %209 : vector<2x1x128xi1> to vector<2x1x128xi32>
    %cst_44 = arith.constant dense<0> : vector<2x1xi32>
    %211 = vector.multi_reduction <add>, %210, %cst_44 [2] : vector<2x1x128xi32> to vector<2x1xi32>
    %212 = vector.shape_cast %211 : vector<2x1xi32> to vector<2x1x1xi32>
    %213 = arith.cmpi slt, %212, %48 : vector<2x1x1xi32>
    %214 = arith.select %213, %207, %205 : vector<2x1x1xi1>, vector<2x1x1xi32>
    %c4096_i32 = arith.constant 4096 : i32
    %215 = vector.broadcast %c4096_i32 : i32 to vector<2x1x1xi32>
    %216 = arith.addi %214, %215 : vector<2x1x1xi32>
    %217 = vector.broadcast %216 : vector<2x1x1xi32> to vector<2x1x128xi32>
    %218 = arith.cmpi slt, %51, %217 : vector<2x1x128xi32>
    %219 = arith.extui %218 : vector<2x1x128xi1> to vector<2x1x128xi32>
    %cst_45 = arith.constant dense<0> : vector<2x1xi32>
    %220 = vector.multi_reduction <add>, %219, %cst_45 [2] : vector<2x1x128xi32> to vector<2x1xi32>
    %221 = vector.shape_cast %220 : vector<2x1xi32> to vector<2x1x1xi32>
    %222 = arith.cmpi slt, %221, %48 : vector<2x1x1xi32>
    %223 = arith.select %222, %216, %214 : vector<2x1x1xi1>, vector<2x1x1xi32>
    %c2048_i32 = arith.constant 2048 : i32
    %224 = vector.broadcast %c2048_i32 : i32 to vector<2x1x1xi32>
    %225 = arith.addi %223, %224 : vector<2x1x1xi32>
    %226 = vector.broadcast %225 : vector<2x1x1xi32> to vector<2x1x128xi32>
    %227 = arith.cmpi slt, %51, %226 : vector<2x1x128xi32>
    %228 = arith.extui %227 : vector<2x1x128xi1> to vector<2x1x128xi32>
    %cst_46 = arith.constant dense<0> : vector<2x1xi32>
    %229 = vector.multi_reduction <add>, %228, %cst_46 [2] : vector<2x1x128xi32> to vector<2x1xi32>
    %230 = vector.shape_cast %229 : vector<2x1xi32> to vector<2x1x1xi32>
    %231 = arith.cmpi slt, %230, %48 : vector<2x1x1xi32>
    %232 = arith.select %231, %225, %223 : vector<2x1x1xi1>, vector<2x1x1xi32>
    %c1024_i32 = arith.constant 1024 : i32
    %233 = vector.broadcast %c1024_i32 : i32 to vector<2x1x1xi32>
    %234 = arith.addi %232, %233 : vector<2x1x1xi32>
    %235 = vector.broadcast %234 : vector<2x1x1xi32> to vector<2x1x128xi32>
    %236 = arith.cmpi slt, %51, %235 : vector<2x1x128xi32>
    %237 = arith.extui %236 : vector<2x1x128xi1> to vector<2x1x128xi32>
    %cst_47 = arith.constant dense<0> : vector<2x1xi32>
    %238 = vector.multi_reduction <add>, %237, %cst_47 [2] : vector<2x1x128xi32> to vector<2x1xi32>
    %239 = vector.shape_cast %238 : vector<2x1xi32> to vector<2x1x1xi32>
    %240 = arith.cmpi slt, %239, %48 : vector<2x1x1xi32>
    %241 = arith.select %240, %234, %232 : vector<2x1x1xi1>, vector<2x1x1xi32>
    %c512_i32 = arith.constant 512 : i32
    %242 = vector.broadcast %c512_i32 : i32 to vector<2x1x1xi32>
    %243 = arith.addi %241, %242 : vector<2x1x1xi32>
    %244 = vector.broadcast %243 : vector<2x1x1xi32> to vector<2x1x128xi32>
    %245 = arith.cmpi slt, %51, %244 : vector<2x1x128xi32>
    %246 = arith.extui %245 : vector<2x1x128xi1> to vector<2x1x128xi32>
    %cst_48 = arith.constant dense<0> : vector<2x1xi32>
    %247 = vector.multi_reduction <add>, %246, %cst_48 [2] : vector<2x1x128xi32> to vector<2x1xi32>
    %248 = vector.shape_cast %247 : vector<2x1xi32> to vector<2x1x1xi32>
    %249 = arith.cmpi slt, %248, %48 : vector<2x1x1xi32>
    %250 = arith.select %249, %243, %241 : vector<2x1x1xi1>, vector<2x1x1xi32>
    %c256_i32 = arith.constant 256 : i32
    %251 = vector.broadcast %c256_i32 : i32 to vector<2x1x1xi32>
    %252 = arith.addi %250, %251 : vector<2x1x1xi32>
    %253 = vector.broadcast %252 : vector<2x1x1xi32> to vector<2x1x128xi32>
    %254 = arith.cmpi slt, %51, %253 : vector<2x1x128xi32>
    %255 = arith.extui %254 : vector<2x1x128xi1> to vector<2x1x128xi32>
    %cst_49 = arith.constant dense<0> : vector<2x1xi32>
    %256 = vector.multi_reduction <add>, %255, %cst_49 [2] : vector<2x1x128xi32> to vector<2x1xi32>
    %257 = vector.shape_cast %256 : vector<2x1xi32> to vector<2x1x1xi32>
    %258 = arith.cmpi slt, %257, %48 : vector<2x1x1xi32>
    %259 = arith.select %258, %252, %250 : vector<2x1x1xi1>, vector<2x1x1xi32>
    %c128_i32 = arith.constant 128 : i32
    %260 = vector.broadcast %c128_i32 : i32 to vector<2x1x1xi32>
    %261 = arith.addi %259, %260 : vector<2x1x1xi32>
    %262 = vector.broadcast %261 : vector<2x1x1xi32> to vector<2x1x128xi32>
    %263 = arith.cmpi slt, %51, %262 : vector<2x1x128xi32>
    %264 = arith.extui %263 : vector<2x1x128xi1> to vector<2x1x128xi32>
    %cst_50 = arith.constant dense<0> : vector<2x1xi32>
    %265 = vector.multi_reduction <add>, %264, %cst_50 [2] : vector<2x1x128xi32> to vector<2x1xi32>
    %266 = vector.shape_cast %265 : vector<2x1xi32> to vector<2x1x1xi32>
    %267 = arith.cmpi slt, %266, %48 : vector<2x1x1xi32>
    %268 = arith.select %267, %261, %259 : vector<2x1x1xi1>, vector<2x1x1xi32>
    %c64_i32 = arith.constant 64 : i32
    %269 = vector.broadcast %c64_i32 : i32 to vector<2x1x1xi32>
    %270 = arith.addi %268, %269 : vector<2x1x1xi32>
    %271 = vector.broadcast %270 : vector<2x1x1xi32> to vector<2x1x128xi32>
    %272 = arith.cmpi slt, %51, %271 : vector<2x1x128xi32>
    %273 = arith.extui %272 : vector<2x1x128xi1> to vector<2x1x128xi32>
    %cst_51 = arith.constant dense<0> : vector<2x1xi32>
    %274 = vector.multi_reduction <add>, %273, %cst_51 [2] : vector<2x1x128xi32> to vector<2x1xi32>
    %275 = vector.shape_cast %274 : vector<2x1xi32> to vector<2x1x1xi32>
    %276 = arith.cmpi slt, %275, %48 : vector<2x1x1xi32>
    %277 = arith.select %276, %270, %268 : vector<2x1x1xi1>, vector<2x1x1xi32>
    %c32_i32 = arith.constant 32 : i32
    %278 = vector.broadcast %c32_i32 : i32 to vector<2x1x1xi32>
    %279 = arith.addi %277, %278 : vector<2x1x1xi32>
    %280 = vector.broadcast %279 : vector<2x1x1xi32> to vector<2x1x128xi32>
    %281 = arith.cmpi slt, %51, %280 : vector<2x1x128xi32>
    %282 = arith.extui %281 : vector<2x1x128xi1> to vector<2x1x128xi32>
    %cst_52 = arith.constant dense<0> : vector<2x1xi32>
    %283 = vector.multi_reduction <add>, %282, %cst_52 [2] : vector<2x1x128xi32> to vector<2x1xi32>
    %284 = vector.shape_cast %283 : vector<2x1xi32> to vector<2x1x1xi32>
    %285 = arith.cmpi slt, %284, %48 : vector<2x1x1xi32>
    %286 = arith.select %285, %279, %277 : vector<2x1x1xi1>, vector<2x1x1xi32>
    %c16_i32 = arith.constant 16 : i32
    %287 = vector.broadcast %c16_i32 : i32 to vector<2x1x1xi32>
    %288 = arith.addi %286, %287 : vector<2x1x1xi32>
    %289 = vector.broadcast %288 : vector<2x1x1xi32> to vector<2x1x128xi32>
    %290 = arith.cmpi slt, %51, %289 : vector<2x1x128xi32>
    %291 = arith.extui %290 : vector<2x1x128xi1> to vector<2x1x128xi32>
    %cst_53 = arith.constant dense<0> : vector<2x1xi32>
    %292 = vector.multi_reduction <add>, %291, %cst_53 [2] : vector<2x1x128xi32> to vector<2x1xi32>
    %293 = vector.shape_cast %292 : vector<2x1xi32> to vector<2x1x1xi32>
    %294 = arith.cmpi slt, %293, %48 : vector<2x1x1xi32>
    %295 = arith.select %294, %288, %286 : vector<2x1x1xi1>, vector<2x1x1xi32>
    %c8_i32 = arith.constant 8 : i32
    %296 = vector.broadcast %c8_i32 : i32 to vector<2x1x1xi32>
    %297 = arith.addi %295, %296 : vector<2x1x1xi32>
    %298 = vector.broadcast %297 : vector<2x1x1xi32> to vector<2x1x128xi32>
    %299 = arith.cmpi slt, %51, %298 : vector<2x1x128xi32>
    %300 = arith.extui %299 : vector<2x1x128xi1> to vector<2x1x128xi32>
    %cst_54 = arith.constant dense<0> : vector<2x1xi32>
    %301 = vector.multi_reduction <add>, %300, %cst_54 [2] : vector<2x1x128xi32> to vector<2x1xi32>
    %302 = vector.shape_cast %301 : vector<2x1xi32> to vector<2x1x1xi32>
    %303 = arith.cmpi slt, %302, %48 : vector<2x1x1xi32>
    %304 = arith.select %303, %297, %295 : vector<2x1x1xi1>, vector<2x1x1xi32>
    %c4_i32 = arith.constant 4 : i32
    %305 = vector.broadcast %c4_i32 : i32 to vector<2x1x1xi32>
    %306 = arith.addi %304, %305 : vector<2x1x1xi32>
    %307 = vector.broadcast %306 : vector<2x1x1xi32> to vector<2x1x128xi32>
    %308 = arith.cmpi slt, %51, %307 : vector<2x1x128xi32>
    %309 = arith.extui %308 : vector<2x1x128xi1> to vector<2x1x128xi32>
    %cst_55 = arith.constant dense<0> : vector<2x1xi32>
    %310 = vector.multi_reduction <add>, %309, %cst_55 [2] : vector<2x1x128xi32> to vector<2x1xi32>
    %311 = vector.shape_cast %310 : vector<2x1xi32> to vector<2x1x1xi32>
    %312 = arith.cmpi slt, %311, %48 : vector<2x1x1xi32>
    %313 = arith.select %312, %306, %304 : vector<2x1x1xi1>, vector<2x1x1xi32>
    %c2_i32 = arith.constant 2 : i32
    %314 = vector.broadcast %c2_i32 : i32 to vector<2x1x1xi32>
    %315 = arith.addi %313, %314 : vector<2x1x1xi32>
    %316 = vector.broadcast %315 : vector<2x1x1xi32> to vector<2x1x128xi32>
    %317 = arith.cmpi slt, %51, %316 : vector<2x1x128xi32>
    %318 = arith.extui %317 : vector<2x1x128xi1> to vector<2x1x128xi32>
    %cst_56 = arith.constant dense<0> : vector<2x1xi32>
    %319 = vector.multi_reduction <add>, %318, %cst_56 [2] : vector<2x1x128xi32> to vector<2x1xi32>
    %320 = vector.shape_cast %319 : vector<2x1xi32> to vector<2x1x1xi32>
    %321 = arith.cmpi slt, %320, %48 : vector<2x1x1xi32>
    %322 = arith.select %321, %315, %313 : vector<2x1x1xi1>, vector<2x1x1xi32>
    %c1_i32 = arith.constant 1 : i32
    %323 = vector.broadcast %c1_i32 : i32 to vector<2x1x1xi32>
    %324 = arith.addi %322, %323 : vector<2x1x1xi32>
    %325 = vector.broadcast %324 : vector<2x1x1xi32> to vector<2x1x128xi32>
    %326 = arith.cmpi slt, %51, %325 : vector<2x1x128xi32>
    %327 = arith.extui %326 : vector<2x1x128xi1> to vector<2x1x128xi32>
    %cst_57 = arith.constant dense<0> : vector<2x1xi32>
    %328 = vector.multi_reduction <add>, %327, %cst_57 [2] : vector<2x1x128xi32> to vector<2x1xi32>
    %329 = vector.shape_cast %328 : vector<2x1xi32> to vector<2x1x1xi32>
    %330 = arith.cmpi slt, %329, %48 : vector<2x1x1xi32>
    %331 = arith.select %330, %324, %322 : vector<2x1x1xi1>, vector<2x1x1xi32>
    %332 = vector.broadcast %331 : vector<2x1x1xi32> to vector<2x1x128xi32>
    %333 = arith.cmpi sle, %51, %332 : vector<2x1x128xi32>
    %334 = arith.andi %5, %333 : vector<2x1x128xi1>
    %c0_i32_58 = arith.constant 0 : i32
    %335 = vector.broadcast %c0_i32_58 : i32 to vector<2x1x1xi32>
    %336 = arith.cmpi sgt, %48, %335 : vector<2x1x1xi32>
    %337 = vector.broadcast %336 : vector<2x1x1xi1> to vector<2x1x128xi1>
    %338 = arith.andi %334, %337 : vector<2x1x128xi1>
    %339 = arith.ori %2, %338 : vector<2x1x128xi1>
    %340 = arith.extui %339 : vector<2x1x128xi1> to vector<2x1x128xi32>
    %341 = arith.sitofp %340 : vector<2x1x128xi32> to vector<2x1x128xf32>
    %342 = arith.mulf %39, %341 : vector<2x1x128xf32>
    %343 = vector.shape_cast %342 : vector<2x1x128xf32> to vector<1x2x1x128xf32>
    %cst_59 = arith.constant dense<0.000000e+00> : vector<1xf32>
    %344 = vector.multi_reduction <add>, %343, %cst_59 [1, 2, 3] : vector<1x2x1x128xf32> to vector<1xf32>
    %345 = vector.shape_cast %344 : vector<1xf32> to vector<1x1x1x1xf32>
    %346 = vector.extract %345[0, 0, 0, 0] : f32 from vector<1x1x1x1xf32>
    %347 = vector.broadcast %23 : f32 to vector<1x1x1xf32>
    %c0_60 = arith.constant 0 : index
    %c0_61 = arith.constant 0 : index
    %c0_62 = arith.constant 0 : index
    %348 = vector.load %arg6[%c0_60, %c0_61, %c0_62] : memref<1x1x1xf32, #tpu.memory_space<vmem>>, vector<1x1x1xf32>
    tpu.vector_store %arg6[%c0_60, %c0_61, %c0_62], %347 {strides = array<i32>} : memref<1x1x1xf32, #tpu.memory_space<vmem>>, vector<1x1x1xf32>,
    %349 = vector.broadcast %346 : f32 to vector<1x1x1xf32>
    %c0_63 = arith.constant 0 : index
    %c0_64 = arith.constant 0 : index
    %c0_65 = arith.constant 0 : index
    %350 = vector.load %arg7[%c0_63, %c0_64, %c0_65] : memref<1x1x1xf32, #tpu.memory_space<vmem>>, vector<1x1x1xf32>
    tpu.vector_store %arg7[%c0_63, %c0_64, %c0_65], %349 {strides = array<i32>} : memref<1x1x1xf32, #tpu.memory_space<vmem>>, vector<1x1x1xf32>,
    %351 = vector.shape_cast %4 : vector<2x1x128xf32> to vector<1x2x1x128xf32>
    %cst_66 = arith.constant dense<0.000000e+00> : vector<1xf32>
    %352 = vector.multi_reduction <add>, %351, %cst_66 [1, 2, 3] : vector<1x2x1x128xf32> to vector<1xf32>
    %353 = vector.shape_cast %352 : vector<1xf32> to vector<1x1x1x1xf32>
    %354 = vector.extract %353[0, 0, 0, 0] : f32 from vector<1x1x1x1xf32>
    %355 = vector.broadcast %354 : f32 to vector<1x1x1xf32>
    %c0_67 = arith.constant 0 : index
    %c0_68 = arith.constant 0 : index
    %c0_69 = arith.constant 0 : index
    %356 = vector.load %arg8[%c0_67, %c0_68, %c0_69] : memref<1x1x1xf32, #tpu.memory_space<vmem>>, vector<1x1x1xf32>
    tpu.vector_store %arg8[%c0_67, %c0_68, %c0_69], %355 {strides = array<i32>} : memref<1x1x1xf32, #tpu.memory_space<vmem>>, vector<1x1x1xf32>,
    return
  }
  func.func @transform_0(%arg0: i32) -> (i32, i32, i32) {
    %c0_i32 = arith.constant 0 : i32
    %c0_i32_0 = arith.constant 0 : i32
    %c0_i32_1 = arith.constant 0 : i32
    return %arg0, %c0_i32, %c0_i32_0 : i32, i32, i32
  }
  func.func @transform_1(%arg0: i32) -> (i32, i32, i32) {
    %c0_i32 = arith.constant 0 : i32
    %c0_i32_0 = arith.constant 0 : i32
    %c0_i32_1 = arith.constant 0 : i32
    return %arg0, %c0_i32, %c0_i32_0 : i32, i32, i32
  }
  func.func @transform_2(%arg0: i32) -> (i32, i32, i32) {
    %c0_i32 = arith.constant 0 : i32
    %c0_i32_0 = arith.constant 0 : i32
    %c0_i32_1 = arith.constant 0 : i32
    return %arg0, %c0_i32, %c0_i32_0 : i32, i32, i32
  }
  func.func @transform_3(%arg0: i32) -> (i32, i32, i32) {
    %c0_i32 = arith.constant 0 : i32
    %c0_i32_0 = arith.constant 0 : i32
    %c0_i32_1 = arith.constant 0 : i32
    return %arg0, %c0_i32, %c0_i32_0 : i32, i32, i32
  }
  func.func @transform_4(%arg0: i32) -> (i32, i32, i32) {
    %c0_i32 = arith.constant 0 : i32
    %c0_i32_0 = arith.constant 0 : i32
    %c0_i32_1 = arith.constant 0 : i32
    return %arg0, %c0_i32, %c0_i32_0 : i32, i32, i32
  }
  func.func @transform_5(%arg0: i32) -> (i32, i32, i32) {
    %c0_i32 = arith.constant 0 : i32
    %c0_i32_0 = arith.constant 0 : i32
    %c0_i32_1 = arith.constant 0 : i32
    return %arg0, %c0_i32, %c0_i32_0 : i32, i32, i32
  }
  func.func @transform_6(%arg0: i32) -> (i32, i32, i32) {
    %c0_i32 = arith.constant 0 : i32
    %c0_i32_0 = arith.constant 0 : i32
    %c0_i32_1 = arith.constant 0 : i32
    return %arg0, %c0_i32, %c0_i32_0 : i32, i32, i32
  }
  func.func @transform_7(%arg0: i32) -> (i32, i32, i32) {
    %c0_i32 = arith.constant 0 : i32
    %c0_i32_0 = arith.constant 0 : i32
    %c0_i32_1 = arith.constant 0 : i32
    return %arg0, %c0_i32, %c0_i32_0 : i32, i32, i32
  }
}

</mosaic_0001>

<bundles_post_ra>
// kernel: tpu_custom_call.1
= control target key start
LH: loop header
LB: loop body
LE: loop exit
PB: predicated region body
PF: predicated region fallthrough
CT: control target
= control target key end

     0   :  { %13 = vsyncpa [#allocation3], 0  ;;  %s2093_s0 = inlined_call_operand.hbm [shape: f32[2,4,128], index: 0, kind: input, shape index: {}]   ;;  %s2094_s1 = inlined_call_operand.hbm [shape: f32[2,4,128], index: 1, kind: input, shape index: {}]   ;;  %s2095_s2 = inlined_call_operand.hbm [shape: s32[2,1,128], index: 2, kind: input, shape index: {}]   ;;  %s2096_s3 = inlined_call_operand.hbm [shape: f32[2,2,128], index: 3, kind: input, shape index: {}]   ;;  %s2097_s4 = inlined_call_operand.vmem [shape: s32[2,1,128], index: 4, kind: input, shape index: {}]   ;;  %s2098_s5 = inlined_call_operand.hbm [shape: f32[1,1,1], index: 5, kind: output, shape index: {0}]   ;;  %s2099_s6 = inlined_call_operand.hbm [shape: f32[1,1,1], index: 6, kind: output, shape index: {1}]   ;;  %s2100_s7 = inlined_call_operand.hbm [shape: f32[1,1,1], index: 7, kind: output, shape index: {2}]  }
   0x1   :  { %14 = vsyncpa [#allocation6], 0 }
   0x2   :  { %15 = vsyncpa [#allocation9], 0 }
   0x3   :  { %16 = vsyncpa [#allocation4], 0 }
   0x4   :  { %17 = vsyncpa [#allocation12], 0  ;;  %s35_s26 = sshll.u32 %s2094_s1, 4  ;;  %s1659_s27 = smov [#allocation5]   ;;  %s36_s26 = int_to_ptr.hbm [resolvable:$true] %s35_s26 }
   0x5   :  { %s37_s28 = sshll.u32 %s1659_s27, 4  ;;  %s22_s8 = sshll.u32 %s2093_s0, 4  ;;  %s38_s28 = int_to_ptr.vmem [resolvable:$true] %s37_s28  ;;  %s23_s8 = int_to_ptr.hbm [resolvable:$true] %s22_s8 }
   0x6   :  { %s1660_s9 = smov 64   ;;  %s1661_s10 = smov 4  }
   0x7   :  { %43 = dma.hbm_to_vmem [thread:$0]  %s36_s26, 128, %s38_s28, [#allocation6], %s1660_s9, %s1660_s9, %s1661_s10  }
   0x8   :  { %s1662_s11 = smov [#allocation2]   ;;  %s48_s15 = sshll.u32 %s2095_s2, 4  ;;  %s49_s15 = int_to_ptr.hbm [resolvable:$true] %s48_s15 }
   0x9   :  { %s24_s12 = sshll.u32 %s1662_s11, 4  ;;  %s1663_s1 = smov [#allocation7]   ;;  %s25_s12 = int_to_ptr.vmem [resolvable:$true] %s24_s12 }
   0xa   :  { %30 = dma.hbm_to_vmem [thread:$0]  %s23_s8, 128, %s25_s12, [#allocation3], %s1660_s9, %s1660_s9, %s1661_s10  }
   0xb   :  { %s50_s16 = sshll.u32 %s1663_s1, 4  ;;  %s61_s0 = sshll.u32 %s2096_s3, 4  ;;  %s51_s16 = int_to_ptr.vmem [resolvable:$true] %s50_s16  ;;  %s62_s0 = int_to_ptr.hbm [resolvable:$true] %s61_s0 }
   0xc   :  { %s1664_s19 = smov 16   ;;  %s1665_s20 = smov 1  }
   0xd   :  { %56 = dma.hbm_to_vmem [thread:$0]  %s49_s15, 32, %s51_s16, [#allocation6], %s1664_s19, %s1664_s19, %s1665_s20  }
   0xe   :  { %s1666_s21 = smov [#allocation8]   ;;  %s1667_s23 = smov 32  }
   0xf   :  { %s63_s22 = sshll.u32 %s1666_s21, 4  ;;  %s1668_s24 = smov 2   ;;  %s64_s22 = int_to_ptr.vmem [resolvable:$true] %s63_s22 }
  0x10   :  { %69 = dma.hbm_to_vmem [thread:$0]  %s62_s0, 64, %s64_s22, [#allocation9], %s1667_s23, %s1667_s23, %s1668_s24  }
  0x11   :  { %1649 = dma.done.wait [#allocation3], 128  }
  0x12   :  { %1650 = vsyncadd [#allocation3], 4294967168 }
  0x13   :  { %1651 = dma.done.wait [#allocation6], 160  }
  0x14   :  { %1652 = vsyncadd [#allocation6], 4294967136 }
  0x15   :  { %1653 = dma.done.wait [#allocation9], 64  }
  0x16   :  { %1654 = vsyncadd [#allocation9], 4294967232  ;;  %v1727_v0 = vld [vmem:[#allocation7] sm:$0x1]  ;;  %vm165_vm0 = vcmask 1040384   ;;  %v1669_v2 = vmov 0  }
  0x17   :  { %v1729_v1 = vld [vmem:[#allocation7 + $0x1] sm:$0x1]  ;;  %vm90_vm1 = vcmp.gt.s32.totalorder %v1727_v0, 0  ;;  %vm1670_vm3 = vmmov 1   ;;  %v226_v5 = vld [vmem:[%s2097_s4] sm:$0x1] }
  0x18   :  { %vm91_vm2 = vcmp.gt.s32.totalorder %v1729_v1, 0  ;;  %v92_v3 = vsel %vm90_vm1, 1, %v1669_v2  ;;  %vm1738_vm4 = vmxor %vm90_vm1, %vm1670_vm3  ;;  %v227_v24 = vld [vmem:[%s2097_s4 + $0x1] sm:$0x1]  ;;  %s1402_s28 = sshll.u32 %s2098_s5, 4  ;;  %s1672_s29 = smov [#allocation10]   ;;  %s1403_s28 = int_to_ptr.hbm [resolvable:$true] %s1402_s28 }
  0x19   :  { %v93_v6 = vsel %vm91_vm2, 1, %v1669_v2  ;;  %v166_v7 = vsel %vm165_vm0, %v92_v3, 0  ;;  %v192_v8 = vsel %vm1738_vm4, 1, %v1669_v2  ;;  %vm1754_vm5 = vmxor %vm91_vm2, %vm1670_vm3  ;;  %v1761_v14 = vsel %vm1738_vm4, %v226_v5, 2147483647  ;;  %s1400_s30 = sshll.u32 %s1672_s29, 4  ;;  %s1401_s30 = int_to_ptr.vmem [resolvable:$true] %s1400_s30 }
  0x1a   :  { %v168_v10 = vshrl.u32 %v166_v7, 16  ;;  %v167_v11 = vand.u32 65535, %v166_v7  ;;  %v194_v12 = vsel %vm165_vm0, %v192_v8, 0  ;;  %v179_v15 = vsel %vm165_vm0, %v93_v6, 0  ;;  %s1673_s9 = smov [#allocation11]   ;;  %s1413_s13 = sshll.u32 %s2099_s6, 4  ;;  %s1414_s13 = int_to_ptr.hbm [resolvable:$true] %s1413_s13 }
  0x1b   :  { %v196_v13 = vshrl.u32 %v194_v12, 16  ;;  %v193_v16 = vsel %vm1754_vm5, 1, %v1669_v2  ;;  %v181_v21 = vshrl.u32 %v179_v15, 16  ;;  %v180_v22 = vand.u32 65535, %v179_v15  ;;  %s1411_s10 = sshll.u32 %s1673_s9, 4  ;;  %s1674_s14 = smov [#allocation13]   ;;  %s1412_s10 = int_to_ptr.vmem [resolvable:$true] %s1411_s10 }
  0x1c   :  { %v170_v17 = vcvt.s32.f32 %v168_v10  ;;  %v169_v18 = vcvt.s32.f32 %v167_v11  ;;  %v207_v19 = vsel %vm165_vm0, %v193_v16, 0  ;;  %vm230_vm6 = vcmp.lt.s32.totalorder %v1761_v14, 1073741824  ;;  %s1422_s15 = sshll.u32 %s1674_s14, 4  ;;  %s1424_s16 = sshll.u32 %s2100_s7, 4  ;;  %s1423_s15 = int_to_ptr.vmem [resolvable:$true] %s1422_s15  ;;  %s1425_s16 = int_to_ptr.hbm [resolvable:$true] %s1424_s16 }
  0x1d   :  { %v198_v20 = vcvt.s32.f32 %v196_v13  ;;  %v209_v23 = vshrl.u32 %v207_v19, 16  ;;  %v232_v25 = vsel %vm230_vm6, 1, %v1669_v2  ;;  %v183_v26 = vcvt.s32.f32 %v181_v21 }
  0x1e   :  { %173 = vadd.xlane.f32.xlu0 %v170_v17  ;;  %171 = vadd.xlane.f32.xlu1 %v169_v18  ;;  %v182_v27 = vcvt.s32.f32 %v180_v22  ;;  %v1775_v28 = vsel %vm1754_vm5, %v227_v24, 2147483647  ;;  %v234_v30 = vsel %vm165_vm0, %v232_v25, 0  ;;  %v195_v31 = vand.u32 65535, %v194_v12 }
  0x1f   :  { %201 = vadd.xlane.f32.xlu2 %v198_v20  ;;  %v211_v29 = vcvt.s32.f32 %v209_v23  ;;  %vm231_vm7 = vcmp.lt.s32.totalorder %v1775_v28, 1073741824  ;;  %v208_v32 = vand.u32 65535, %v207_v19  ;;  %v236_v33 = vshrl.u32 %v234_v30, 16 }
  0x20   :  { %v233_v34 = vsel %vm231_vm7, 1, %v1669_v2  ;;  %v197_v35 = vcvt.s32.f32 %v195_v31  ;;  %v235_v40 = vand.u32 65535, %v234_v30 }
  0x21   :  { %v210_v36 = vcvt.s32.f32 %v208_v32  ;;  %v238_v37 = vcvt.s32.f32 %v236_v33  ;;  %v247_v38 = vsel %vm165_vm0, %v233_v34, 0 }
  0x22   :  { %v249_v39 = vshrl.u32 %v247_v38, 16  ;;  %v248_v41 = vand.u32 65535, %v247_v38  ;;  %v237_v43 = vcvt.s32.f32 %v235_v40 }
  0x24   :  { %v251_v42 = vcvt.s32.f32 %v249_v39  ;;  %v250_v44 = vcvt.s32.f32 %v248_v41 }
  0x26   :  { %186 = vadd.xlane.f32.xlu0 %v183_v26  ;;  %184 = vadd.xlane.f32.xlu1 %v182_v27 }
  0x27   :  { %214 = vadd.xlane.f32.xlu2 %v211_v29 }
  0x2e   :  { %199 = vadd.xlane.f32.xlu0 %v197_v35  ;;  %212 = vadd.xlane.f32.xlu1 %v210_v36 }
  0x2f   :  { %241 = vadd.xlane.f32.xlu2 %v238_v37 }
  0x36   :  { %254 = vadd.xlane.f32.xlu0 %v251_v42  ;;  %239 = vadd.xlane.f32.xlu1 %v237_v43 }
  0x37   :  { %252 = vadd.xlane.f32.xlu2 %v250_v44 }
  0x91   :  { %v174_v45 = vpop.xlane.xlu0 %173  ;;  %v172_v46 = vpop.xlane.xlu1 %171 }
  0x92   :  { %v202_v47 = vpop.xlane.xlu2 %201  ;;  %v176_v51 = vcvt.f32.s32 %v174_v45  ;;  %v175_v56 = vcvt.f32.s32 %v172_v46 }
  0x93   :  { %v204_v54 = vcvt.f32.s32 %v202_v47 }
  0x94   :  { %v177_v53 = vshll.u32 %v176_v51, 16 }
  0x95   :  { %v205_v63 = vshll.u32 %v204_v54, 16 }
  0x96   :  { %v178_v62 = vadd.s32 %v177_v53, %v175_v56 }
  0x98   :  { %v220_v11 = vmul.u32 3, %v178_v62 }
  0x99   :  { %v187_v48 = vpop.xlane.xlu0 %186  ;;  %v185_v49 = vpop.xlane.xlu1 %184 }
  0x9a   :  { %v215_v50 = vpop.xlane.xlu2 %214  ;;  %v189_v52 = vcvt.f32.s32 %v187_v48  ;;  %v188_v3 = vcvt.f32.s32 %v185_v49 }
  0x9b   :  { %v217_v55 = vcvt.f32.s32 %v215_v50 }
  0x9c   :  { %v190_v59 = vshll.u32 %v189_v52, 16 }
  0x9d   :  { %v218_v5 = vshll.u32 %v217_v55, 16 }
  0x9e   :  { %v191_v8 = vadd.s32 %v190_v59, %v188_v3 }
  0xa0   :  { %v221_v17 = vmul.u32 3, %v191_v8 }
  0xa1   :  { %v200_v57 = vpop.xlane.xlu0 %199  ;;  %v213_v58 = vpop.xlane.xlu1 %212 }
  0xa2   :  { %v203_v60 = vcvt.f32.s32 %v200_v57  ;;  %v242_v61 = vpop.xlane.xlu2 %241  ;;  %v216_v6 = vcvt.f32.s32 %v213_v58 }
  0xa3   :  { %v244_v7 = vcvt.f32.s32 %v242_v61 }
  0xa4   :  { %v206_v10 = vadd.s32 %v205_v63, %v203_v60  ;;  %v219_v12 = vadd.s32 %v218_v5, %v216_v6 }
  0xa5   :  { %v245_v13 = vshll.u32 %v244_v7, 16 }
  0xa6   :  { %vm222_vm8 = vcmp.lt.s32.totalorder %v220_v11, %v206_v10  ;;  %vm224_vm9 = vcmp.lt.s32.totalorder %v221_v17, %v219_v12 }
  0xa7   :  { %v1781_v24 = vsel %vm222_vm8, %v220_v11, %v206_v10  ;;  %v1784_v26 = vsel %vm224_vm9, %v221_v17, %v219_v12 }
  0xa9   :  { %v255_v15 = vpop.xlane.xlu0 %254  ;;  %v240_v16 = vpop.xlane.xlu1 %239 }
  0xaa   :  { %v257_v18 = vcvt.f32.s32 %v255_v15  ;;  %v243_v19 = vcvt.f32.s32 %v240_v16  ;;  %v253_v20 = vpop.xlane.xlu2 %252 }
  0xab   :  { %v256_v21 = vcvt.f32.s32 %v253_v20 }
  0xac   :  { %v258_v22 = vshll.u32 %v257_v18, 16  ;;  %v246_v23 = vadd.s32 %v245_v13, %v243_v19 }
  0xae   :  { %vm260_vm10 = vcmp.lt.s32.totalorder %v246_v23, %v1781_v24  ;;  %v259_v25 = vadd.s32 %v258_v22, %v256_v21 }
  0xaf   :  { %v262_v27 = vsel %vm260_vm10, 1073741824, %v1669_v2 }
  0xb0   :  { %v264_v29 = vadd.s32 536870912, %v262_v27  ;;  %vm261_vm11 = vcmp.lt.s32.totalorder %v259_v25, %v1784_v26 }
  0xb1   :  { %v263_v30 = vsel %vm261_vm11, 1073741824, %v1669_v2 }
  0xb2   :  { %v265_v31 = vadd.s32 536870912, %v263_v30  ;;  %vm266_vm12 = vcmp.lt.s32.totalorder %v1761_v14, %v264_v29 }
  0xb3   :  { %v268_v32 = vsel %vm266_vm12, 1, %v1669_v2 }
  0xb4   :  { %v270_v33 = vsel %vm165_vm0, %v268_v32, 0  ;;  %vm267_vm13 = vcmp.lt.s32.totalorder %v1775_v28, %v265_v31 }
  0xb5   :  { %v272_v34 = vshrl.u32 %v270_v33, 16  ;;  %v271_v35 = vand.u32 65535, %v270_v33  ;;  %v269_v36 = vsel %vm267_vm13, 1, %v1669_v2 }
  0xb6   :  { %v283_v37 = vsel %vm165_vm0, %v269_v36, 0 }
  0xb7   :  { %v274_v38 = vcvt.s32.f32 %v272_v34  ;;  %v273_v39 = vcvt.s32.f32 %v271_v35  ;;  %v285_v40 = vshrl.u32 %v283_v37, 16  ;;  %v284_v42 = vand.u32 65535, %v283_v37 }
  0xb9   :  { %277 = vadd.xlane.f32.xlu0 %v274_v38  ;;  %275 = vadd.xlane.f32.xlu2 %v273_v39  ;;  %v287_v41 = vcvt.s32.f32 %v285_v40  ;;  %v286_v43 = vcvt.s32.f32 %v284_v42 }
  0xbb   :  { %290 = vadd.xlane.f32.xlu1 %v287_v41 }
  0xc1   :  { %288 = vadd.xlane.f32.xlu0 %v286_v43 }
 0x12c   :  { %v278_v44 = vpop.xlane.xlu0 %277  ;;  %v276_v45 = vpop.xlane.xlu2 %275 }
 0x12d   :  { %v280_v46 = vcvt.f32.s32 %v278_v44  ;;  %v279_v49 = vcvt.f32.s32 %v276_v45 }
 0x12e   :  { %v291_v47 = vpop.xlane.xlu1 %290 }
 0x12f   :  { %v281_v48 = vshll.u32 %v280_v46, 16  ;;  %v293_v51 = vcvt.f32.s32 %v291_v47 }
 0x131   :  { %v282_v50 = vadd.s32 %v281_v48, %v279_v49  ;;  %v294_v54 = vshll.u32 %v293_v51, 16 }
 0x133   :  { %vm296_vm14 = vcmp.lt.s32.totalorder %v282_v50, %v1781_v24 }
 0x134   :  { %v298_v52 = vsel %vm296_vm14, %v264_v29, %v262_v27  ;;  %v289_v53 = vpop.xlane.xlu0 %288 }
 0x135   :  { %v292_v55 = vcvt.f32.s32 %v289_v53  ;;  %v300_v56 = vadd.s32 268435456, %v298_v52 }
 0x137   :  { %v295_v57 = vadd.s32 %v294_v54, %v292_v55  ;;  %vm302_vm15 = vcmp.lt.s32.totalorder %v1761_v14, %v300_v56 }
 0x138   :  { %v304_v58 = vsel %vm302_vm15, 1, %v1669_v2 }
 0x139   :  { %vm297_vm3 = vcmp.lt.s32.totalorder %v295_v57, %v1784_v26  ;;  %v306_v59 = vsel %vm165_vm0, %v304_v58, 0 }
 0x13a   :  { %v299_v60 = vsel %vm297_vm3, %v265_v31, %v263_v30  ;;  %v308_v61 = vshrl.u32 %v306_v59, 16  ;;  %v307_v62 = vand.u32 65535, %v306_v59 }
 0x13b   :  { %v301_v63 = vadd.s32 268435456, %v299_v60 }
 0x13c   :  { %v310_v3 = vcvt.s32.f32 %v308_v61  ;;  %v309_v5 = vcvt.s32.f32 %v307_v62 }
 0x13d   :  { %vm303_vm6 = vcmp.lt.s32.totalorder %v1775_v28, %v301_v63 }
 0x13e   :  { %313 = vadd.xlane.f32.xlu1 %v310_v3  ;;  %311 = vadd.xlane.f32.xlu0 %v309_v5  ;;  %v305_v6 = vsel %vm303_vm6, 1, %v1669_v2 }
 0x13f   :  { %v319_v7 = vsel %vm165_vm0, %v305_v6, 0 }
 0x140   :  { %v321_v8 = vshrl.u32 %v319_v7, 16  ;;  %v320_v10 = vand.u32 65535, %v319_v7 }
 0x142   :  { %v323_v11 = vcvt.s32.f32 %v321_v8  ;;  %v322_v12 = vcvt.s32.f32 %v320_v10 }
 0x144   :  { %326 = vadd.xlane.f32.xlu2 %v323_v11 }
 0x146   :  { %324 = vadd.xlane.f32.xlu1 %v322_v12 }
 0x1b1   :  { %v312_v13 = vpop.xlane.xlu0 %311  ;;  %v314_v15 = vpop.xlane.xlu1 %313 }
 0x1b2   :  { %v316_v16 = vcvt.f32.s32 %v314_v15  ;;  %v315_v17 = vcvt.f32.s32 %v312_v13 }
 0x1b4   :  { %v317_v18 = vshll.u32 %v316_v16, 16 }
 0x1b6   :  { %v318_v19 = vadd.s32 %v317_v18, %v315_v17 }
 0x1b7   :  { %v327_v20 = vpop.xlane.xlu2 %326 }
 0x1b8   :  { %vm332_vm7 = vcmp.lt.s32.totalorder %v318_v19, %v1781_v24  ;;  %v329_v21 = vcvt.f32.s32 %v327_v20 }
 0x1b9   :  { %v334_v22 = vsel %vm332_vm7, %v300_v56, %v298_v52  ;;  %v325_v23 = vpop.xlane.xlu1 %324 }
 0x1ba   :  { %v330_v25 = vshll.u32 %v329_v21, 16  ;;  %v328_v27 = vcvt.f32.s32 %v325_v23  ;;  %v336_v29 = vadd.s32 134217728, %v334_v22 }
 0x1bc   :  { %v331_v30 = vadd.s32 %v330_v25, %v328_v27  ;;  %vm338_vm8 = vcmp.lt.s32.totalorder %v1761_v14, %v336_v29 }
 0x1bd   :  { %v340_v31 = vsel %vm338_vm8, 1, %v1669_v2 }
 0x1be   :  { %vm333_vm9 = vcmp.lt.s32.totalorder %v331_v30, %v1784_v26  ;;  %v342_v32 = vsel %vm165_vm0, %v340_v31, 0 }
 0x1bf   :  { %v335_v33 = vsel %vm333_vm9, %v301_v63, %v299_v60  ;;  %v344_v34 = vshrl.u32 %v342_v32, 16  ;;  %v343_v35 = vand.u32 65535, %v342_v32 }
 0x1c0   :  { %v337_v36 = vadd.s32 134217728, %v335_v33 }
 0x1c1   :  { %v346_v37 = vcvt.s32.f32 %v344_v34  ;;  %v345_v38 = vcvt.s32.f32 %v343_v35 }
 0x1c2   :  { %vm339_vm10 = vcmp.lt.s32.totalorder %v1775_v28, %v337_v36 }
 0x1c3   :  { %349 = vadd.xlane.f32.xlu2 %v346_v37  ;;  %347 = vadd.xlane.f32.xlu1 %v345_v38  ;;  %v341_v39 = vsel %vm339_vm10, 1, %v1669_v2 }
 0x1c4   :  { %v355_v40 = vsel %vm165_vm0, %v341_v39, 0 }
 0x1c5   :  { %v357_v41 = vshrl.u32 %v355_v40, 16  ;;  %v356_v42 = vand.u32 65535, %v355_v40 }
 0x1c7   :  { %v359_v43 = vcvt.s32.f32 %v357_v41  ;;  %v358_v44 = vcvt.s32.f32 %v356_v42 }
 0x1c9   :  { %362 = vadd.xlane.f32.xlu0 %v359_v43 }
 0x1cb   :  { %360 = vadd.xlane.f32.xlu2 %v358_v44 }
 0x236   :  { %v350_v45 = vpop.xlane.xlu2 %349  ;;  %v348_v46 = vpop.xlane.xlu1 %347 }
 0x237   :  { %v352_v47 = vcvt.f32.s32 %v350_v45  ;;  %v351_v49 = vcvt.f32.s32 %v348_v46 }
 0x239   :  { %v353_v48 = vshll.u32 %v352_v47, 16 }
 0x23b   :  { %v354_v50 = vadd.s32 %v353_v48, %v351_v49 }
 0x23c   :  { %v363_v51 = vpop.xlane.xlu0 %362 }
 0x23d   :  { %vm368_vm11 = vcmp.lt.s32.totalorder %v354_v50, %v1781_v24  ;;  %v365_v52 = vcvt.f32.s32 %v363_v51 }
 0x23e   :  { %v370_v53 = vsel %vm368_vm11, %v336_v29, %v334_v22  ;;  %v361_v54 = vpop.xlane.xlu2 %360 }
 0x23f   :  { %v366_v55 = vshll.u32 %v365_v52, 16  ;;  %v364_v56 = vcvt.f32.s32 %v361_v54  ;;  %v372_v57 = vadd.s32 67108864, %v370_v53 }
 0x241   :  { %v367_v58 = vadd.s32 %v366_v55, %v364_v56  ;;  %vm374_vm12 = vcmp.lt.s32.totalorder %v1761_v14, %v372_v57 }
 0x242   :  { %v376_v59 = vsel %vm374_vm12, 1, %v1669_v2 }
 0x243   :  { %vm369_vm13 = vcmp.lt.s32.totalorder %v367_v58, %v1784_v26  ;;  %v378_v60 = vsel %vm165_vm0, %v376_v59, 0 }
 0x244   :  { %v371_v61 = vsel %vm369_vm13, %v337_v36, %v335_v33  ;;  %v380_v62 = vshrl.u32 %v378_v60, 16  ;;  %v379_v63 = vand.u32 65535, %v378_v60 }
 0x245   :  { %v373_v3 = vadd.s32 67108864, %v371_v61 }
 0x246   :  { %v382_v5 = vcvt.s32.f32 %v380_v62  ;;  %v381_v6 = vcvt.s32.f32 %v379_v63 }
 0x247   :  { %vm375_vm14 = vcmp.lt.s32.totalorder %v1775_v28, %v373_v3 }
 0x248   :  { %385 = vadd.xlane.f32.xlu0 %v382_v5  ;;  %383 = vadd.xlane.f32.xlu2 %v381_v6  ;;  %v377_v7 = vsel %vm375_vm14, 1, %v1669_v2 }
 0x249   :  { %v391_v8 = vsel %vm165_vm0, %v377_v7, 0 }
 0x24a   :  { %v393_v10 = vshrl.u32 %v391_v8, 16  ;;  %v392_v11 = vand.u32 65535, %v391_v8 }
 0x24c   :  { %v395_v12 = vcvt.s32.f32 %v393_v10  ;;  %v394_v13 = vcvt.s32.f32 %v392_v11 }
 0x24e   :  { %398 = vadd.xlane.f32.xlu1 %v395_v12 }
 0x250   :  { %396 = vadd.xlane.f32.xlu0 %v394_v13 }
 0x2bb   :  { %v386_v15 = vpop.xlane.xlu0 %385  ;;  %v384_v16 = vpop.xlane.xlu2 %383 }
 0x2bc   :  { %v388_v17 = vcvt.f32.s32 %v386_v15  ;;  %v387_v19 = vcvt.f32.s32 %v384_v16 }
 0x2be   :  { %v389_v18 = vshll.u32 %v388_v17, 16 }
 0x2c0   :  { %v390_v20 = vadd.s32 %v389_v18, %v387_v19 }
 0x2c1   :  { %v399_v21 = vpop.xlane.xlu1 %398 }
 0x2c2   :  { %vm404_vm15 = vcmp.lt.s32.totalorder %v390_v20, %v1781_v24  ;;  %v401_v22 = vcvt.f32.s32 %v399_v21 }
 0x2c3   :  { %v406_v23 = vsel %vm404_vm15, %v372_v57, %v370_v53  ;;  %v397_v25 = vpop.xlane.xlu0 %396 }
 0x2c4   :  { %v402_v27 = vshll.u32 %v401_v22, 16  ;;  %v400_v29 = vcvt.f32.s32 %v397_v25  ;;  %v408_v30 = vadd.s32 33554432, %v406_v23 }
 0x2c6   :  { %v403_v31 = vadd.s32 %v402_v27, %v400_v29  ;;  %vm410_vm3 = vcmp.lt.s32.totalorder %v1761_v14, %v408_v30 }
 0x2c7   :  { %v412_v32 = vsel %vm410_vm3, 1, %v1669_v2 }
 0x2c8   :  { %vm405_vm6 = vcmp.lt.s32.totalorder %v403_v31, %v1784_v26  ;;  %v414_v33 = vsel %vm165_vm0, %v412_v32, 0 }
 0x2c9   :  { %v407_v34 = vsel %vm405_vm6, %v373_v3, %v371_v61  ;;  %v416_v35 = vshrl.u32 %v414_v33, 16  ;;  %v415_v36 = vand.u32 65535, %v414_v33 }
 0x2ca   :  { %v409_v37 = vadd.s32 33554432, %v407_v34 }
 0x2cb   :  { %v418_v38 = vcvt.s32.f32 %v416_v35  ;;  %v417_v39 = vcvt.s32.f32 %v415_v36 }
 0x2cc   :  { %vm411_vm7 = vcmp.lt.s32.totalorder %v1775_v28, %v409_v37 }
 0x2cd   :  { %421 = vadd.xlane.f32.xlu1 %v418_v38  ;;  %419 = vadd.xlane.f32.xlu0 %v417_v39  ;;  %v413_v40 = vsel %vm411_vm7, 1, %v1669_v2 }
 0x2ce   :  { %v427_v41 = vsel %vm165_vm0, %v413_v40, 0 }
 0x2cf   :  { %v429_v42 = vshrl.u32 %v427_v41, 16  ;;  %v428_v43 = vand.u32 65535, %v427_v41 }
 0x2d1   :  { %v431_v44 = vcvt.s32.f32 %v429_v42  ;;  %v430_v45 = vcvt.s32.f32 %v428_v43 }
 0x2d3   :  { %434 = vadd.xlane.f32.xlu2 %v431_v44 }
 0x2d5   :  { %432 = vadd.xlane.f32.xlu1 %v430_v45 }
 0x340   :  { %v420_v46 = vpop.xlane.xlu0 %419  ;;  %v422_v47 = vpop.xlane.xlu1 %421 }
 0x341   :  { %v424_v48 = vcvt.f32.s32 %v422_v47  ;;  %v423_v49 = vcvt.f32.s32 %v420_v46 }
 0x343   :  { %v425_v50 = vshll.u32 %v424_v48, 16 }
 0x345   :  { %v426_v51 = vadd.s32 %v425_v50, %v423_v49 }
 0x346   :  { %v435_v52 = vpop.xlane.xlu2 %434 }
 0x347   :  { %vm440_vm8 = vcmp.lt.s32.totalorder %v426_v51, %v1781_v24  ;;  %v437_v53 = vcvt.f32.s32 %v435_v52 }
 0x348   :  { %v442_v54 = vsel %vm440_vm8, %v408_v30, %v406_v23  ;;  %v433_v55 = vpop.xlane.xlu1 %432 }
 0x349   :  { %v438_v56 = vshll.u32 %v437_v53, 16  ;;  %v436_v57 = vcvt.f32.s32 %v433_v55  ;;  %v444_v58 = vadd.s32 16777216, %v442_v54 }
 0x34b   :  { %v439_v59 = vadd.s32 %v438_v56, %v436_v57  ;;  %vm446_vm9 = vcmp.lt.s32.totalorder %v1761_v14, %v444_v58 }
 0x34c   :  { %v448_v60 = vsel %vm446_vm9, 1, %v1669_v2 }
 0x34d   :  { %vm441_vm10 = vcmp.lt.s32.totalorder %v439_v59, %v1784_v26  ;;  %v450_v61 = vsel %vm165_vm0, %v448_v60, 0 }
 0x34e   :  { %v443_v62 = vsel %vm441_vm10, %v409_v37, %v407_v34  ;;  %v452_v63 = vshrl.u32 %v450_v61, 16  ;;  %v451_v3 = vand.u32 65535, %v450_v61 }
 0x34f   :  { %v445_v5 = vadd.s32 16777216, %v443_v62 }
 0x350   :  { %v454_v6 = vcvt.s32.f32 %v452_v63  ;;  %v453_v7 = vcvt.s32.f32 %v451_v3 }
 0x351   :  { %vm447_vm11 = vcmp.lt.s32.totalorder %v1775_v28, %v445_v5 }
 0x352   :  { %457 = vadd.xlane.f32.xlu2 %v454_v6  ;;  %455 = vadd.xlane.f32.xlu1 %v453_v7  ;;  %v449_v8 = vsel %vm447_vm11, 1, %v1669_v2 }
 0x353   :  { %v463_v10 = vsel %vm165_vm0, %v449_v8, 0 }
 0x354   :  { %v465_v11 = vshrl.u32 %v463_v10, 16  ;;  %v464_v12 = vand.u32 65535, %v463_v10 }
 0x356   :  { %v467_v13 = vcvt.s32.f32 %v465_v11  ;;  %v466_v15 = vcvt.s32.f32 %v464_v12 }
 0x358   :  { %470 = vadd.xlane.f32.xlu0 %v467_v13 }
 0x35a   :  { %468 = vadd.xlane.f32.xlu2 %v466_v15 }
 0x3c5   :  { %v458_v16 = vpop.xlane.xlu2 %457  ;;  %v456_v17 = vpop.xlane.xlu1 %455 }
 0x3c6   :  { %v460_v18 = vcvt.f32.s32 %v458_v16  ;;  %v459_v20 = vcvt.f32.s32 %v456_v17 }
 0x3c8   :  { %v461_v19 = vshll.u32 %v460_v18, 16 }
 0x3ca   :  { %v462_v21 = vadd.s32 %v461_v19, %v459_v20 }
 0x3cb   :  { %v471_v22 = vpop.xlane.xlu0 %470 }
 0x3cc   :  { %vm476_vm12 = vcmp.lt.s32.totalorder %v462_v21, %v1781_v24  ;;  %v473_v23 = vcvt.f32.s32 %v471_v22 }
 0x3cd   :  { %v478_v25 = vsel %vm476_vm12, %v444_v58, %v442_v54  ;;  %v469_v27 = vpop.xlane.xlu2 %468 }
 0x3ce   :  { %v474_v29 = vshll.u32 %v473_v23, 16  ;;  %v472_v30 = vcvt.f32.s32 %v469_v27  ;;  %v480_v31 = vadd.s32 8388608, %v478_v25 }
 0x3d0   :  { %v475_v32 = vadd.s32 %v474_v29, %v472_v30  ;;  %vm482_vm13 = vcmp.lt.s32.totalorder %v1761_v14, %v480_v31 }
 0x3d1   :  { %v484_v33 = vsel %vm482_vm13, 1, %v1669_v2 }
 0x3d2   :  { %vm477_vm14 = vcmp.lt.s32.totalorder %v475_v32, %v1784_v26  ;;  %v486_v34 = vsel %vm165_vm0, %v484_v33, 0 }
 0x3d3   :  { %v479_v35 = vsel %vm477_vm14, %v445_v5, %v443_v62  ;;  %v488_v36 = vshrl.u32 %v486_v34, 16  ;;  %v487_v37 = vand.u32 65535, %v486_v34 }
 0x3d4   :  { %v481_v38 = vadd.s32 8388608, %v479_v35 }
 0x3d5   :  { %v490_v39 = vcvt.s32.f32 %v488_v36  ;;  %v489_v40 = vcvt.s32.f32 %v487_v37 }
 0x3d6   :  { %vm483_vm15 = vcmp.lt.s32.totalorder %v1775_v28, %v481_v38 }
 0x3d7   :  { %493 = vadd.xlane.f32.xlu0 %v490_v39  ;;  %491 = vadd.xlane.f32.xlu2 %v489_v40  ;;  %v485_v41 = vsel %vm483_vm15, 1, %v1669_v2 }
 0x3d8   :  { %v499_v42 = vsel %vm165_vm0, %v485_v41, 0 }
 0x3d9   :  { %v501_v43 = vshrl.u32 %v499_v42, 16  ;;  %v500_v44 = vand.u32 65535, %v499_v42 }
 0x3db   :  { %v503_v45 = vcvt.s32.f32 %v501_v43  ;;  %v502_v46 = vcvt.s32.f32 %v500_v44 }
 0x3dd   :  { %506 = vadd.xlane.f32.xlu1 %v503_v45 }
 0x3df   :  { %504 = vadd.xlane.f32.xlu0 %v502_v46 }
 0x44a   :  { %v494_v47 = vpop.xlane.xlu0 %493  ;;  %v492_v48 = vpop.xlane.xlu2 %491 }
 0x44b   :  { %v496_v49 = vcvt.f32.s32 %v494_v47  ;;  %v495_v51 = vcvt.f32.s32 %v492_v48 }
 0x44d   :  { %v497_v50 = vshll.u32 %v496_v49, 16 }
 0x44f   :  { %v498_v52 = vadd.s32 %v497_v50, %v495_v51 }
 0x450   :  { %v507_v53 = vpop.xlane.xlu1 %506 }
 0x451   :  { %vm512_vm3 = vcmp.lt.s32.totalorder %v498_v52, %v1781_v24  ;;  %v509_v54 = vcvt.f32.s32 %v507_v53 }
 0x452   :  { %v514_v55 = vsel %vm512_vm3, %v480_v31, %v478_v25  ;;  %v505_v56 = vpop.xlane.xlu0 %504 }
 0x453   :  { %v510_v57 = vshll.u32 %v509_v54, 16  ;;  %v508_v58 = vcvt.f32.s32 %v505_v56  ;;  %v516_v59 = vadd.s32 4194304, %v514_v55 }
 0x455   :  { %v511_v60 = vadd.s32 %v510_v57, %v508_v58  ;;  %vm518_vm6 = vcmp.lt.s32.totalorder %v1761_v14, %v516_v59 }
 0x456   :  { %v520_v61 = vsel %vm518_vm6, 1, %v1669_v2 }
 0x457   :  { %vm513_vm7 = vcmp.lt.s32.totalorder %v511_v60, %v1784_v26  ;;  %v522_v62 = vsel %vm165_vm0, %v520_v61, 0 }
 0x458   :  { %v515_v63 = vsel %vm513_vm7, %v481_v38, %v479_v35  ;;  %v524_v3 = vshrl.u32 %v522_v62, 16  ;;  %v523_v5 = vand.u32 65535, %v522_v62 }
 0x459   :  { %v517_v6 = vadd.s32 4194304, %v515_v63 }
 0x45a   :  { %v526_v7 = vcvt.s32.f32 %v524_v3  ;;  %v525_v8 = vcvt.s32.f32 %v523_v5 }
 0x45b   :  { %vm519_vm8 = vcmp.lt.s32.totalorder %v1775_v28, %v517_v6 }
 0x45c   :  { %529 = vadd.xlane.f32.xlu1 %v526_v7  ;;  %527 = vadd.xlane.f32.xlu0 %v525_v8  ;;  %v521_v10 = vsel %vm519_vm8, 1, %v1669_v2 }
 0x45d   :  { %v535_v11 = vsel %vm165_vm0, %v521_v10, 0 }
 0x45e   :  { %v537_v12 = vshrl.u32 %v535_v11, 16  ;;  %v536_v13 = vand.u32 65535, %v535_v11 }
 0x460   :  { %v539_v15 = vcvt.s32.f32 %v537_v12  ;;  %v538_v16 = vcvt.s32.f32 %v536_v13 }
 0x462   :  { %542 = vadd.xlane.f32.xlu2 %v539_v15 }
 0x464   :  { %540 = vadd.xlane.f32.xlu1 %v538_v16 }
 0x4cf   :  { %v528_v17 = vpop.xlane.xlu0 %527  ;;  %v530_v18 = vpop.xlane.xlu1 %529 }
 0x4d0   :  { %v532_v19 = vcvt.f32.s32 %v530_v18  ;;  %v531_v20 = vcvt.f32.s32 %v528_v17 }
 0x4d2   :  { %v533_v21 = vshll.u32 %v532_v19, 16 }
 0x4d4   :  { %v534_v22 = vadd.s32 %v533_v21, %v531_v20 }
 0x4d5   :  { %v543_v23 = vpop.xlane.xlu2 %542 }
 0x4d6   :  { %vm548_vm9 = vcmp.lt.s32.totalorder %v534_v22, %v1781_v24  ;;  %v545_v25 = vcvt.f32.s32 %v543_v23 }
 0x4d7   :  { %v550_v27 = vsel %vm548_vm9, %v516_v59, %v514_v55  ;;  %v541_v29 = vpop.xlane.xlu1 %540 }
 0x4d8   :  { %v546_v30 = vshll.u32 %v545_v25, 16  ;;  %v544_v31 = vcvt.f32.s32 %v541_v29  ;;  %v552_v32 = vadd.s32 2097152, %v550_v27 }
 0x4da   :  { %v547_v33 = vadd.s32 %v546_v30, %v544_v31  ;;  %vm554_vm10 = vcmp.lt.s32.totalorder %v1761_v14, %v552_v32 }
 0x4db   :  { %v556_v34 = vsel %vm554_vm10, 1, %v1669_v2 }
 0x4dc   :  { %vm549_vm11 = vcmp.lt.s32.totalorder %v547_v33, %v1784_v26  ;;  %v558_v35 = vsel %vm165_vm0, %v556_v34, 0 }
 0x4dd   :  { %v551_v36 = vsel %vm549_vm11, %v517_v6, %v515_v63  ;;  %v560_v37 = vshrl.u32 %v558_v35, 16  ;;  %v559_v38 = vand.u32 65535, %v558_v35 }
 0x4de   :  { %v553_v39 = vadd.s32 2097152, %v551_v36 }
 0x4df   :  { %v562_v40 = vcvt.s32.f32 %v560_v37  ;;  %v561_v41 = vcvt.s32.f32 %v559_v38 }
 0x4e0   :  { %vm555_vm12 = vcmp.lt.s32.totalorder %v1775_v28, %v553_v39 }
 0x4e1   :  { %565 = vadd.xlane.f32.xlu2 %v562_v40  ;;  %563 = vadd.xlane.f32.xlu1 %v561_v41  ;;  %v557_v42 = vsel %vm555_vm12, 1, %v1669_v2 }
 0x4e2   :  { %v571_v43 = vsel %vm165_vm0, %v557_v42, 0 }
 0x4e3   :  { %v573_v44 = vshrl.u32 %v571_v43, 16  ;;  %v572_v45 = vand.u32 65535, %v571_v43 }
 0x4e5   :  { %v575_v46 = vcvt.s32.f32 %v573_v44  ;;  %v574_v47 = vcvt.s32.f32 %v572_v45 }
 0x4e7   :  { %578 = vadd.xlane.f32.xlu0 %v575_v46 }
 0x4e9   :  { %576 = vadd.xlane.f32.xlu2 %v574_v47 }
 0x554   :  { %v566_v48 = vpop.xlane.xlu2 %565  ;;  %v564_v49 = vpop.xlane.xlu1 %563 }
 0x555   :  { %v568_v50 = vcvt.f32.s32 %v566_v48  ;;  %v567_v52 = vcvt.f32.s32 %v564_v49 }
 0x557   :  { %v569_v51 = vshll.u32 %v568_v50, 16 }
 0x559   :  { %v570_v53 = vadd.s32 %v569_v51, %v567_v52 }
 0x55a   :  { %v579_v54 = vpop.xlane.xlu0 %578 }
 0x55b   :  { %vm584_vm13 = vcmp.lt.s32.totalorder %v570_v53, %v1781_v24  ;;  %v581_v55 = vcvt.f32.s32 %v579_v54 }
 0x55c   :  { %v586_v56 = vsel %vm584_vm13, %v552_v32, %v550_v27  ;;  %v577_v57 = vpop.xlane.xlu2 %576 }
 0x55d   :  { %v582_v58 = vshll.u32 %v581_v55, 16  ;;  %v580_v59 = vcvt.f32.s32 %v577_v57  ;;  %v588_v60 = vadd.s32 1048576, %v586_v56 }
 0x55f   :  { %v583_v61 = vadd.s32 %v582_v58, %v580_v59  ;;  %vm590_vm14 = vcmp.lt.s32.totalorder %v1761_v14, %v588_v60 }
 0x560   :  { %v592_v62 = vsel %vm590_vm14, 1, %v1669_v2 }
 0x561   :  { %vm585_vm15 = vcmp.lt.s32.totalorder %v583_v61, %v1784_v26  ;;  %v594_v63 = vsel %vm165_vm0, %v592_v62, 0 }
 0x562   :  { %v587_v3 = vsel %vm585_vm15, %v553_v39, %v551_v36  ;;  %v596_v5 = vshrl.u32 %v594_v63, 16  ;;  %v595_v6 = vand.u32 65535, %v594_v63 }
 0x563   :  { %v589_v7 = vadd.s32 1048576, %v587_v3 }
 0x564   :  { %v598_v8 = vcvt.s32.f32 %v596_v5  ;;  %v597_v10 = vcvt.s32.f32 %v595_v6 }
 0x565   :  { %vm591_vm3 = vcmp.lt.s32.totalorder %v1775_v28, %v589_v7 }
 0x566   :  { %601 = vadd.xlane.f32.xlu0 %v598_v8  ;;  %599 = vadd.xlane.f32.xlu2 %v597_v10  ;;  %v593_v11 = vsel %vm591_vm3, 1, %v1669_v2 }
 0x567   :  { %v607_v12 = vsel %vm165_vm0, %v593_v11, 0 }
 0x568   :  { %v609_v13 = vshrl.u32 %v607_v12, 16  ;;  %v608_v15 = vand.u32 65535, %v607_v12 }
 0x56a   :  { %v611_v16 = vcvt.s32.f32 %v609_v13  ;;  %v610_v17 = vcvt.s32.f32 %v608_v15 }
 0x56c   :  { %614 = vadd.xlane.f32.xlu1 %v611_v16 }
 0x56e   :  { %612 = vadd.xlane.f32.xlu0 %v610_v17 }
 0x5d9   :  { %v602_v18 = vpop.xlane.xlu0 %601  ;;  %v600_v19 = vpop.xlane.xlu2 %599 }
 0x5da   :  { %v604_v20 = vcvt.f32.s32 %v602_v18  ;;  %v603_v22 = vcvt.f32.s32 %v600_v19 }
 0x5dc   :  { %v605_v21 = vshll.u32 %v604_v20, 16 }
 0x5de   :  { %v606_v23 = vadd.s32 %v605_v21, %v603_v22 }
 0x5df   :  { %v615_v25 = vpop.xlane.xlu1 %614 }
 0x5e0   :  { %vm620_vm6 = vcmp.lt.s32.totalorder %v606_v23, %v1781_v24  ;;  %v617_v27 = vcvt.f32.s32 %v615_v25 }
 0x5e1   :  { %v622_v29 = vsel %vm620_vm6, %v588_v60, %v586_v56  ;;  %v613_v30 = vpop.xlane.xlu0 %612 }
 0x5e2   :  { %v618_v31 = vshll.u32 %v617_v27, 16  ;;  %v616_v32 = vcvt.f32.s32 %v613_v30  ;;  %v624_v33 = vadd.s32 524288, %v622_v29 }
 0x5e4   :  { %v619_v34 = vadd.s32 %v618_v31, %v616_v32  ;;  %vm626_vm7 = vcmp.lt.s32.totalorder %v1761_v14, %v624_v33 }
 0x5e5   :  { %v628_v35 = vsel %vm626_vm7, 1, %v1669_v2 }
 0x5e6   :  { %vm621_vm8 = vcmp.lt.s32.totalorder %v619_v34, %v1784_v26  ;;  %v630_v36 = vsel %vm165_vm0, %v628_v35, 0 }
 0x5e7   :  { %v623_v37 = vsel %vm621_vm8, %v589_v7, %v587_v3  ;;  %v632_v38 = vshrl.u32 %v630_v36, 16  ;;  %v631_v39 = vand.u32 65535, %v630_v36 }
 0x5e8   :  { %v625_v40 = vadd.s32 524288, %v623_v37 }
 0x5e9   :  { %v634_v41 = vcvt.s32.f32 %v632_v38  ;;  %v633_v42 = vcvt.s32.f32 %v631_v39 }
 0x5ea   :  { %vm627_vm9 = vcmp.lt.s32.totalorder %v1775_v28, %v625_v40 }
 0x5eb   :  { %637 = vadd.xlane.f32.xlu1 %v634_v41  ;;  %635 = vadd.xlane.f32.xlu0 %v633_v42  ;;  %v629_v43 = vsel %vm627_vm9, 1, %v1669_v2 }
 0x5ec   :  { %v643_v44 = vsel %vm165_vm0, %v629_v43, 0 }
 0x5ed   :  { %v645_v45 = vshrl.u32 %v643_v44, 16  ;;  %v644_v46 = vand.u32 65535, %v643_v44 }
 0x5ef   :  { %v647_v47 = vcvt.s32.f32 %v645_v45  ;;  %v646_v48 = vcvt.s32.f32 %v644_v46 }
 0x5f1   :  { %650 = vadd.xlane.f32.xlu2 %v647_v47 }
 0x5f3   :  { %648 = vadd.xlane.f32.xlu1 %v646_v48 }
 0x65e   :  { %v636_v49 = vpop.xlane.xlu0 %635  ;;  %v638_v50 = vpop.xlane.xlu1 %637 }
 0x65f   :  { %v640_v51 = vcvt.f32.s32 %v638_v50  ;;  %v639_v52 = vcvt.f32.s32 %v636_v49 }
 0x661   :  { %v641_v53 = vshll.u32 %v640_v51, 16 }
 0x663   :  { %v642_v54 = vadd.s32 %v641_v53, %v639_v52 }
 0x664   :  { %v651_v55 = vpop.xlane.xlu2 %650 }
 0x665   :  { %vm656_vm10 = vcmp.lt.s32.totalorder %v642_v54, %v1781_v24  ;;  %v653_v56 = vcvt.f32.s32 %v651_v55 }
 0x666   :  { %v658_v57 = vsel %vm656_vm10, %v624_v33, %v622_v29  ;;  %v649_v58 = vpop.xlane.xlu1 %648 }
 0x667   :  { %v654_v59 = vshll.u32 %v653_v56, 16  ;;  %v652_v60 = vcvt.f32.s32 %v649_v58  ;;  %v660_v61 = vadd.s32 262144, %v658_v57 }
 0x669   :  { %v655_v62 = vadd.s32 %v654_v59, %v652_v60  ;;  %vm662_vm11 = vcmp.lt.s32.totalorder %v1761_v14, %v660_v61 }
 0x66a   :  { %v664_v63 = vsel %vm662_vm11, 1, %v1669_v2 }
 0x66b   :  { %vm657_vm12 = vcmp.lt.s32.totalorder %v655_v62, %v1784_v26  ;;  %v666_v3 = vsel %vm165_vm0, %v664_v63, 0 }
 0x66c   :  { %v659_v5 = vsel %vm657_vm12, %v625_v40, %v623_v37  ;;  %v668_v6 = vshrl.u32 %v666_v3, 16  ;;  %v667_v7 = vand.u32 65535, %v666_v3 }
 0x66d   :  { %v661_v8 = vadd.s32 262144, %v659_v5 }
 0x66e   :  { %v670_v10 = vcvt.s32.f32 %v668_v6  ;;  %v669_v11 = vcvt.s32.f32 %v667_v7 }
 0x66f   :  { %vm663_vm13 = vcmp.lt.s32.totalorder %v1775_v28, %v661_v8 }
 0x670   :  { %673 = vadd.xlane.f32.xlu2 %v670_v10  ;;  %671 = vadd.xlane.f32.xlu1 %v669_v11  ;;  %v665_v12 = vsel %vm663_vm13, 1, %v1669_v2 }
 0x671   :  { %v679_v13 = vsel %vm165_vm0, %v665_v12, 0 }
 0x672   :  { %v681_v15 = vshrl.u32 %v679_v13, 16  ;;  %v680_v16 = vand.u32 65535, %v679_v13 }
 0x674   :  { %v683_v17 = vcvt.s32.f32 %v681_v15  ;;  %v682_v18 = vcvt.s32.f32 %v680_v16 }
 0x676   :  { %686 = vadd.xlane.f32.xlu0 %v683_v17 }
 0x678   :  { %684 = vadd.xlane.f32.xlu2 %v682_v18 }
 0x6e3   :  { %v674_v19 = vpop.xlane.xlu2 %673  ;;  %v672_v20 = vpop.xlane.xlu1 %671 }
 0x6e4   :  { %v676_v21 = vcvt.f32.s32 %v674_v19  ;;  %v675_v23 = vcvt.f32.s32 %v672_v20 }
 0x6e6   :  { %v677_v22 = vshll.u32 %v676_v21, 16 }
 0x6e8   :  { %v678_v25 = vadd.s32 %v677_v22, %v675_v23 }
 0x6e9   :  { %v687_v27 = vpop.xlane.xlu0 %686 }
 0x6ea   :  { %vm692_vm14 = vcmp.lt.s32.totalorder %v678_v25, %v1781_v24  ;;  %v689_v29 = vcvt.f32.s32 %v687_v27 }
 0x6eb   :  { %v694_v30 = vsel %vm692_vm14, %v660_v61, %v658_v57  ;;  %v685_v31 = vpop.xlane.xlu2 %684 }
 0x6ec   :  { %v690_v32 = vshll.u32 %v689_v29, 16  ;;  %v688_v33 = vcvt.f32.s32 %v685_v31  ;;  %v696_v34 = vadd.s32 131072, %v694_v30 }
 0x6ee   :  { %v691_v35 = vadd.s32 %v690_v32, %v688_v33  ;;  %vm698_vm15 = vcmp.lt.s32.totalorder %v1761_v14, %v696_v34 }
 0x6ef   :  { %v700_v36 = vsel %vm698_vm15, 1, %v1669_v2 }
 0x6f0   :  { %vm693_vm3 = vcmp.lt.s32.totalorder %v691_v35, %v1784_v26  ;;  %v702_v37 = vsel %vm165_vm0, %v700_v36, 0 }
 0x6f1   :  { %v695_v38 = vsel %vm693_vm3, %v661_v8, %v659_v5  ;;  %v704_v39 = vshrl.u32 %v702_v37, 16  ;;  %v703_v40 = vand.u32 65535, %v702_v37 }
 0x6f2   :  { %v697_v41 = vadd.s32 131072, %v695_v38 }
 0x6f3   :  { %v706_v42 = vcvt.s32.f32 %v704_v39  ;;  %v705_v43 = vcvt.s32.f32 %v703_v40 }
 0x6f4   :  { %vm699_vm6 = vcmp.lt.s32.totalorder %v1775_v28, %v697_v41 }
 0x6f5   :  { %709 = vadd.xlane.f32.xlu0 %v706_v42  ;;  %707 = vadd.xlane.f32.xlu2 %v705_v43  ;;  %v701_v44 = vsel %vm699_vm6, 1, %v1669_v2 }
 0x6f6   :  { %v715_v45 = vsel %vm165_vm0, %v701_v44, 0 }
 0x6f7   :  { %v717_v46 = vshrl.u32 %v715_v45, 16  ;;  %v716_v47 = vand.u32 65535, %v715_v45 }
 0x6f9   :  { %v719_v48 = vcvt.s32.f32 %v717_v46  ;;  %v718_v49 = vcvt.s32.f32 %v716_v47 }
 0x6fb   :  { %722 = vadd.xlane.f32.xlu1 %v719_v48 }
 0x6fd   :  { %720 = vadd.xlane.f32.xlu0 %v718_v49 }
 0x768   :  { %v710_v50 = vpop.xlane.xlu0 %709  ;;  %v708_v51 = vpop.xlane.xlu2 %707 }
 0x769   :  { %v712_v52 = vcvt.f32.s32 %v710_v50  ;;  %v711_v54 = vcvt.f32.s32 %v708_v51 }
 0x76b   :  { %v713_v53 = vshll.u32 %v712_v52, 16 }
 0x76d   :  { %v714_v55 = vadd.s32 %v713_v53, %v711_v54 }
 0x76e   :  { %v723_v56 = vpop.xlane.xlu1 %722 }
 0x76f   :  { %vm728_vm7 = vcmp.lt.s32.totalorder %v714_v55, %v1781_v24  ;;  %v725_v57 = vcvt.f32.s32 %v723_v56 }
 0x770   :  { %v730_v58 = vsel %vm728_vm7, %v696_v34, %v694_v30  ;;  %v721_v59 = vpop.xlane.xlu0 %720 }
 0x771   :  { %v726_v60 = vshll.u32 %v725_v57, 16  ;;  %v724_v61 = vcvt.f32.s32 %v721_v59  ;;  %v732_v62 = vadd.s32 65536, %v730_v58 }
 0x773   :  { %v727_v63 = vadd.s32 %v726_v60, %v724_v61  ;;  %vm734_vm8 = vcmp.lt.s32.totalorder %v1761_v14, %v732_v62 }
 0x774   :  { %v736_v3 = vsel %vm734_vm8, 1, %v1669_v2 }
 0x775   :  { %vm729_vm9 = vcmp.lt.s32.totalorder %v727_v63, %v1784_v26  ;;  %v738_v5 = vsel %vm165_vm0, %v736_v3, 0 }
 0x776   :  { %v731_v6 = vsel %vm729_vm9, %v697_v41, %v695_v38  ;;  %v740_v7 = vshrl.u32 %v738_v5, 16  ;;  %v739_v8 = vand.u32 65535, %v738_v5 }
 0x777   :  { %v733_v10 = vadd.s32 65536, %v731_v6 }
 0x778   :  { %v742_v11 = vcvt.s32.f32 %v740_v7  ;;  %v741_v12 = vcvt.s32.f32 %v739_v8 }
 0x779   :  { %vm735_vm10 = vcmp.lt.s32.totalorder %v1775_v28, %v733_v10 }
 0x77a   :  { %745 = vadd.xlane.f32.xlu1 %v742_v11  ;;  %743 = vadd.xlane.f32.xlu0 %v741_v12  ;;  %v737_v13 = vsel %vm735_vm10, 1, %v1669_v2 }
 0x77b   :  { %v751_v15 = vsel %vm165_vm0, %v737_v13, 0 }
 0x77c   :  { %v753_v16 = vshrl.u32 %v751_v15, 16  ;;  %v752_v17 = vand.u32 65535, %v751_v15 }
 0x77e   :  { %v755_v18 = vcvt.s32.f32 %v753_v16  ;;  %v754_v19 = vcvt.s32.f32 %v752_v17 }
 0x780   :  { %758 = vadd.xlane.f32.xlu2 %v755_v18 }
 0x782   :  { %756 = vadd.xlane.f32.xlu1 %v754_v19 }
 0x7ed   :  { %v744_v20 = vpop.xlane.xlu0 %743  ;;  %v746_v21 = vpop.xlane.xlu1 %745 }
 0x7ee   :  { %v748_v22 = vcvt.f32.s32 %v746_v21  ;;  %v747_v23 = vcvt.f32.s32 %v744_v20 }
 0x7f0   :  { %v749_v25 = vshll.u32 %v748_v22, 16 }
 0x7f2   :  { %v750_v27 = vadd.s32 %v749_v25, %v747_v23 }
 0x7f3   :  { %v759_v29 = vpop.xlane.xlu2 %758 }
 0x7f4   :  { %vm764_vm11 = vcmp.lt.s32.totalorder %v750_v27, %v1781_v24  ;;  %v761_v30 = vcvt.f32.s32 %v759_v29 }
 0x7f5   :  { %v766_v31 = vsel %vm764_vm11, %v732_v62, %v730_v58  ;;  %v757_v32 = vpop.xlane.xlu1 %756 }
 0x7f6   :  { %v762_v33 = vshll.u32 %v761_v30, 16  ;;  %v760_v34 = vcvt.f32.s32 %v757_v32  ;;  %v768_v35 = vadd.s32 32768, %v766_v31 }
 0x7f8   :  { %v763_v36 = vadd.s32 %v762_v33, %v760_v34  ;;  %vm770_vm12 = vcmp.lt.s32.totalorder %v1761_v14, %v768_v35 }
 0x7f9   :  { %v772_v37 = vsel %vm770_vm12, 1, %v1669_v2 }
 0x7fa   :  { %vm765_vm13 = vcmp.lt.s32.totalorder %v763_v36, %v1784_v26  ;;  %v774_v38 = vsel %vm165_vm0, %v772_v37, 0 }
 0x7fb   :  { %v767_v39 = vsel %vm765_vm13, %v733_v10, %v731_v6  ;;  %v776_v40 = vshrl.u32 %v774_v38, 16  ;;  %v775_v41 = vand.u32 65535, %v774_v38 }
 0x7fc   :  { %v769_v42 = vadd.s32 32768, %v767_v39 }
 0x7fd   :  { %v778_v43 = vcvt.s32.f32 %v776_v40  ;;  %v777_v44 = vcvt.s32.f32 %v775_v41 }
 0x7fe   :  { %vm771_vm14 = vcmp.lt.s32.totalorder %v1775_v28, %v769_v42 }
 0x7ff   :  { %781 = vadd.xlane.f32.xlu2 %v778_v43  ;;  %779 = vadd.xlane.f32.xlu1 %v777_v44  ;;  %v773_v45 = vsel %vm771_vm14, 1, %v1669_v2 }
 0x800   :  { %v787_v46 = vsel %vm165_vm0, %v773_v45, 0 }
 0x801   :  { %v789_v47 = vshrl.u32 %v787_v46, 16  ;;  %v788_v48 = vand.u32 65535, %v787_v46 }
 0x803   :  { %v791_v49 = vcvt.s32.f32 %v789_v47  ;;  %v790_v50 = vcvt.s32.f32 %v788_v48 }
 0x805   :  { %794 = vadd.xlane.f32.xlu0 %v791_v49 }
 0x807   :  { %792 = vadd.xlane.f32.xlu2 %v790_v50 }
 0x872   :  { %v782_v51 = vpop.xlane.xlu2 %781  ;;  %v780_v52 = vpop.xlane.xlu1 %779 }
 0x873   :  { %v784_v53 = vcvt.f32.s32 %v782_v51  ;;  %v783_v55 = vcvt.f32.s32 %v780_v52 }
 0x875   :  { %v785_v54 = vshll.u32 %v784_v53, 16 }
 0x877   :  { %v786_v56 = vadd.s32 %v785_v54, %v783_v55 }
 0x878   :  { %v795_v57 = vpop.xlane.xlu0 %794 }
 0x879   :  { %vm800_vm15 = vcmp.lt.s32.totalorder %v786_v56, %v1781_v24  ;;  %v797_v58 = vcvt.f32.s32 %v795_v57 }
 0x87a   :  { %v802_v59 = vsel %vm800_vm15, %v768_v35, %v766_v31  ;;  %v793_v60 = vpop.xlane.xlu2 %792 }
 0x87b   :  { %v798_v61 = vshll.u32 %v797_v58, 16  ;;  %v796_v62 = vcvt.f32.s32 %v793_v60  ;;  %v804_v63 = vadd.s32 16384, %v802_v59 }
 0x87d   :  { %v799_v3 = vadd.s32 %v798_v61, %v796_v62  ;;  %vm806_vm3 = vcmp.lt.s32.totalorder %v1761_v14, %v804_v63 }
 0x87e   :  { %v808_v5 = vsel %vm806_vm3, 1, %v1669_v2 }
 0x87f   :  { %vm801_vm6 = vcmp.lt.s32.totalorder %v799_v3, %v1784_v26  ;;  %v810_v6 = vsel %vm165_vm0, %v808_v5, 0 }
 0x880   :  { %v803_v7 = vsel %vm801_vm6, %v769_v42, %v767_v39  ;;  %v812_v8 = vshrl.u32 %v810_v6, 16  ;;  %v811_v10 = vand.u32 65535, %v810_v6 }
 0x881   :  { %v805_v11 = vadd.s32 16384, %v803_v7 }
 0x882   :  { %v814_v12 = vcvt.s32.f32 %v812_v8  ;;  %v813_v13 = vcvt.s32.f32 %v811_v10 }
 0x883   :  { %vm807_vm7 = vcmp.lt.s32.totalorder %v1775_v28, %v805_v11 }
 0x884   :  { %817 = vadd.xlane.f32.xlu0 %v814_v12  ;;  %815 = vadd.xlane.f32.xlu2 %v813_v13  ;;  %v809_v15 = vsel %vm807_vm7, 1, %v1669_v2 }
 0x885   :  { %v823_v16 = vsel %vm165_vm0, %v809_v15, 0 }
 0x886   :  { %v825_v17 = vshrl.u32 %v823_v16, 16  ;;  %v824_v18 = vand.u32 65535, %v823_v16 }
 0x888   :  { %v827_v19 = vcvt.s32.f32 %v825_v17  ;;  %v826_v20 = vcvt.s32.f32 %v824_v18 }
 0x88a   :  { %830 = vadd.xlane.f32.xlu1 %v827_v19 }
 0x88c   :  { %828 = vadd.xlane.f32.xlu0 %v826_v20 }
 0x8f7   :  { %v818_v21 = vpop.xlane.xlu0 %817  ;;  %v816_v22 = vpop.xlane.xlu2 %815 }
 0x8f8   :  { %v820_v23 = vcvt.f32.s32 %v818_v21  ;;  %v819_v27 = vcvt.f32.s32 %v816_v22 }
 0x8fa   :  { %v821_v25 = vshll.u32 %v820_v23, 16 }
 0x8fc   :  { %v822_v29 = vadd.s32 %v821_v25, %v819_v27 }
 0x8fd   :  { %v831_v30 = vpop.xlane.xlu1 %830 }
 0x8fe   :  { %vm836_vm8 = vcmp.lt.s32.totalorder %v822_v29, %v1781_v24  ;;  %v833_v31 = vcvt.f32.s32 %v831_v30 }
 0x8ff   :  { %v838_v32 = vsel %vm836_vm8, %v804_v63, %v802_v59  ;;  %v829_v33 = vpop.xlane.xlu0 %828 }
 0x900   :  { %v834_v34 = vshll.u32 %v833_v31, 16  ;;  %v832_v35 = vcvt.f32.s32 %v829_v33  ;;  %v840_v36 = vadd.s32 8192, %v838_v32 }
 0x902   :  { %v835_v37 = vadd.s32 %v834_v34, %v832_v35  ;;  %vm842_vm9 = vcmp.lt.s32.totalorder %v1761_v14, %v840_v36 }
 0x903   :  { %v844_v38 = vsel %vm842_vm9, 1, %v1669_v2 }
 0x904   :  { %vm837_vm10 = vcmp.lt.s32.totalorder %v835_v37, %v1784_v26  ;;  %v846_v39 = vsel %vm165_vm0, %v844_v38, 0 }
 0x905   :  { %v839_v40 = vsel %vm837_vm10, %v805_v11, %v803_v7  ;;  %v848_v41 = vshrl.u32 %v846_v39, 16  ;;  %v847_v42 = vand.u32 65535, %v846_v39 }
 0x906   :  { %v841_v43 = vadd.s32 8192, %v839_v40 }
 0x907   :  { %v850_v44 = vcvt.s32.f32 %v848_v41  ;;  %v849_v45 = vcvt.s32.f32 %v847_v42 }
 0x908   :  { %vm843_vm11 = vcmp.lt.s32.totalorder %v1775_v28, %v841_v43 }
 0x909   :  { %853 = vadd.xlane.f32.xlu1 %v850_v44  ;;  %851 = vadd.xlane.f32.xlu0 %v849_v45  ;;  %v845_v46 = vsel %vm843_vm11, 1, %v1669_v2 }
 0x90a   :  { %v859_v47 = vsel %vm165_vm0, %v845_v46, 0 }
 0x90b   :  { %v861_v48 = vshrl.u32 %v859_v47, 16  ;;  %v860_v49 = vand.u32 65535, %v859_v47 }
 0x90d   :  { %v863_v50 = vcvt.s32.f32 %v861_v48  ;;  %v862_v51 = vcvt.s32.f32 %v860_v49 }
 0x90f   :  { %866 = vadd.xlane.f32.xlu2 %v863_v50 }
 0x911   :  { %864 = vadd.xlane.f32.xlu1 %v862_v51 }
 0x97c   :  { %v852_v52 = vpop.xlane.xlu0 %851  ;;  %v854_v53 = vpop.xlane.xlu1 %853 }
 0x97d   :  { %v856_v54 = vcvt.f32.s32 %v854_v53  ;;  %v855_v55 = vcvt.f32.s32 %v852_v52 }
 0x97f   :  { %v857_v56 = vshll.u32 %v856_v54, 16 }
 0x981   :  { %v858_v57 = vadd.s32 %v857_v56, %v855_v55 }
 0x982   :  { %v867_v58 = vpop.xlane.xlu2 %866 }
 0x983   :  { %vm872_vm12 = vcmp.lt.s32.totalorder %v858_v57, %v1781_v24  ;;  %v869_v59 = vcvt.f32.s32 %v867_v58 }
 0x984   :  { %v874_v60 = vsel %vm872_vm12, %v840_v36, %v838_v32  ;;  %v865_v61 = vpop.xlane.xlu1 %864 }
 0x985   :  { %v870_v62 = vshll.u32 %v869_v59, 16  ;;  %v868_v63 = vcvt.f32.s32 %v865_v61  ;;  %v876_v3 = vadd.s32 4096, %v874_v60 }
 0x987   :  { %v871_v5 = vadd.s32 %v870_v62, %v868_v63  ;;  %vm878_vm13 = vcmp.lt.s32.totalorder %v1761_v14, %v876_v3 }
 0x988   :  { %v880_v6 = vsel %vm878_vm13, 1, %v1669_v2 }
 0x989   :  { %vm873_vm14 = vcmp.lt.s32.totalorder %v871_v5, %v1784_v26  ;;  %v882_v7 = vsel %vm165_vm0, %v880_v6, 0 }
 0x98a   :  { %v875_v8 = vsel %vm873_vm14, %v841_v43, %v839_v40  ;;  %v884_v10 = vshrl.u32 %v882_v7, 16  ;;  %v883_v11 = vand.u32 65535, %v882_v7 }
 0x98b   :  { %v877_v12 = vadd.s32 4096, %v875_v8 }
 0x98c   :  { %v886_v13 = vcvt.s32.f32 %v884_v10  ;;  %v885_v15 = vcvt.s32.f32 %v883_v11 }
 0x98d   :  { %vm879_vm15 = vcmp.lt.s32.totalorder %v1775_v28, %v877_v12 }
 0x98e   :  { %889 = vadd.xlane.f32.xlu2 %v886_v13  ;;  %887 = vadd.xlane.f32.xlu1 %v885_v15  ;;  %v881_v16 = vsel %vm879_vm15, 1, %v1669_v2 }
 0x98f   :  { %v895_v17 = vsel %vm165_vm0, %v881_v16, 0 }
 0x990   :  { %v897_v18 = vshrl.u32 %v895_v17, 16  ;;  %v896_v19 = vand.u32 65535, %v895_v17 }
 0x992   :  { %v899_v20 = vcvt.s32.f32 %v897_v18  ;;  %v898_v21 = vcvt.s32.f32 %v896_v19 }
 0x994   :  { %902 = vadd.xlane.f32.xlu0 %v899_v20 }
 0x996   :  { %900 = vadd.xlane.f32.xlu2 %v898_v21 }
 0xa01   :  { %v890_v22 = vpop.xlane.xlu2 %889  ;;  %v888_v23 = vpop.xlane.xlu1 %887 }
 0xa02   :  { %v892_v25 = vcvt.f32.s32 %v890_v22  ;;  %v891_v29 = vcvt.f32.s32 %v888_v23 }
 0xa04   :  { %v893_v27 = vshll.u32 %v892_v25, 16 }
 0xa06   :  { %v894_v30 = vadd.s32 %v893_v27, %v891_v29 }
 0xa07   :  { %v903_v31 = vpop.xlane.xlu0 %902 }
 0xa08   :  { %vm908_vm3 = vcmp.lt.s32.totalorder %v894_v30, %v1781_v24  ;;  %v905_v32 = vcvt.f32.s32 %v903_v31 }
 0xa09   :  { %v910_v33 = vsel %vm908_vm3, %v876_v3, %v874_v60  ;;  %v901_v34 = vpop.xlane.xlu2 %900 }
 0xa0a   :  { %v906_v35 = vshll.u32 %v905_v32, 16  ;;  %v904_v36 = vcvt.f32.s32 %v901_v34  ;;  %v912_v37 = vadd.s32 2048, %v910_v33 }
 0xa0c   :  { %v907_v38 = vadd.s32 %v906_v35, %v904_v36  ;;  %vm914_vm6 = vcmp.lt.s32.totalorder %v1761_v14, %v912_v37 }
 0xa0d   :  { %v916_v39 = vsel %vm914_vm6, 1, %v1669_v2 }
 0xa0e   :  { %vm909_vm7 = vcmp.lt.s32.totalorder %v907_v38, %v1784_v26  ;;  %v918_v40 = vsel %vm165_vm0, %v916_v39, 0 }
 0xa0f   :  { %v911_v41 = vsel %vm909_vm7, %v877_v12, %v875_v8  ;;  %v920_v42 = vshrl.u32 %v918_v40, 16  ;;  %v919_v43 = vand.u32 65535, %v918_v40 }
 0xa10   :  { %v913_v44 = vadd.s32 2048, %v911_v41 }
 0xa11   :  { %v922_v45 = vcvt.s32.f32 %v920_v42  ;;  %v921_v46 = vcvt.s32.f32 %v919_v43 }
 0xa12   :  { %vm915_vm8 = vcmp.lt.s32.totalorder %v1775_v28, %v913_v44 }
 0xa13   :  { %925 = vadd.xlane.f32.xlu0 %v922_v45  ;;  %923 = vadd.xlane.f32.xlu2 %v921_v46  ;;  %v917_v47 = vsel %vm915_vm8, 1, %v1669_v2 }
 0xa14   :  { %v931_v48 = vsel %vm165_vm0, %v917_v47, 0 }
 0xa15   :  { %v933_v49 = vshrl.u32 %v931_v48, 16  ;;  %v932_v50 = vand.u32 65535, %v931_v48 }
 0xa17   :  { %v935_v51 = vcvt.s32.f32 %v933_v49  ;;  %v934_v52 = vcvt.s32.f32 %v932_v50 }
 0xa19   :  { %938 = vadd.xlane.f32.xlu1 %v935_v51 }
 0xa1b   :  { %936 = vadd.xlane.f32.xlu0 %v934_v52 }
 0xa86   :  { %v926_v53 = vpop.xlane.xlu0 %925  ;;  %v924_v54 = vpop.xlane.xlu2 %923 }
 0xa87   :  { %v928_v55 = vcvt.f32.s32 %v926_v53  ;;  %v927_v57 = vcvt.f32.s32 %v924_v54 }
 0xa89   :  { %v929_v56 = vshll.u32 %v928_v55, 16 }
 0xa8b   :  { %v930_v58 = vadd.s32 %v929_v56, %v927_v57 }
 0xa8c   :  { %v939_v59 = vpop.xlane.xlu1 %938 }
 0xa8d   :  { %vm944_vm9 = vcmp.lt.s32.totalorder %v930_v58, %v1781_v24  ;;  %v941_v60 = vcvt.f32.s32 %v939_v59 }
 0xa8e   :  { %v946_v61 = vsel %vm944_vm9, %v912_v37, %v910_v33  ;;  %v937_v62 = vpop.xlane.xlu0 %936 }
 0xa8f   :  { %v942_v63 = vshll.u32 %v941_v60, 16  ;;  %v940_v3 = vcvt.f32.s32 %v937_v62  ;;  %v948_v5 = vadd.s32 1024, %v946_v61 }
 0xa91   :  { %v943_v6 = vadd.s32 %v942_v63, %v940_v3  ;;  %vm950_vm10 = vcmp.lt.s32.totalorder %v1761_v14, %v948_v5 }
 0xa92   :  { %v952_v7 = vsel %vm950_vm10, 1, %v1669_v2 }
 0xa93   :  { %vm945_vm11 = vcmp.lt.s32.totalorder %v943_v6, %v1784_v26  ;;  %v954_v8 = vsel %vm165_vm0, %v952_v7, 0 }
 0xa94   :  { %v947_v10 = vsel %vm945_vm11, %v913_v44, %v911_v41  ;;  %v956_v11 = vshrl.u32 %v954_v8, 16  ;;  %v955_v12 = vand.u32 65535, %v954_v8 }
 0xa95   :  { %v949_v13 = vadd.s32 1024, %v947_v10 }
 0xa96   :  { %v958_v15 = vcvt.s32.f32 %v956_v11  ;;  %v957_v16 = vcvt.s32.f32 %v955_v12 }
 0xa97   :  { %vm951_vm12 = vcmp.lt.s32.totalorder %v1775_v28, %v949_v13 }
 0xa98   :  { %961 = vadd.xlane.f32.xlu1 %v958_v15  ;;  %959 = vadd.xlane.f32.xlu0 %v957_v16  ;;  %v953_v17 = vsel %vm951_vm12, 1, %v1669_v2 }
 0xa99   :  { %v967_v18 = vsel %vm165_vm0, %v953_v17, 0 }
 0xa9a   :  { %v969_v19 = vshrl.u32 %v967_v18, 16  ;;  %v968_v20 = vand.u32 65535, %v967_v18 }
 0xa9c   :  { %v971_v21 = vcvt.s32.f32 %v969_v19  ;;  %v970_v22 = vcvt.s32.f32 %v968_v20 }
 0xa9e   :  { %974 = vadd.xlane.f32.xlu2 %v971_v21 }
 0xaa0   :  { %972 = vadd.xlane.f32.xlu1 %v970_v22 }
 0xb0b   :  { %v960_v23 = vpop.xlane.xlu0 %959  ;;  %v962_v25 = vpop.xlane.xlu1 %961 }
 0xb0c   :  { %v964_v27 = vcvt.f32.s32 %v962_v25  ;;  %v963_v29 = vcvt.f32.s32 %v960_v23 }
 0xb0e   :  { %v965_v30 = vshll.u32 %v964_v27, 16 }
 0xb10   :  { %v966_v31 = vadd.s32 %v965_v30, %v963_v29 }
 0xb11   :  { %v975_v32 = vpop.xlane.xlu2 %974 }
 0xb12   :  { %vm980_vm13 = vcmp.lt.s32.totalorder %v966_v31, %v1781_v24  ;;  %v977_v33 = vcvt.f32.s32 %v975_v32 }
 0xb13   :  { %v982_v34 = vsel %vm980_vm13, %v948_v5, %v946_v61  ;;  %v973_v35 = vpop.xlane.xlu1 %972 }
 0xb14   :  { %v978_v36 = vshll.u32 %v977_v33, 16  ;;  %v976_v37 = vcvt.f32.s32 %v973_v35  ;;  %v984_v38 = vadd.s32 512, %v982_v34 }
 0xb16   :  { %v979_v39 = vadd.s32 %v978_v36, %v976_v37  ;;  %vm986_vm14 = vcmp.lt.s32.totalorder %v1761_v14, %v984_v38 }
 0xb17   :  { %v988_v40 = vsel %vm986_vm14, 1, %v1669_v2 }
 0xb18   :  { %vm981_vm15 = vcmp.lt.s32.totalorder %v979_v39, %v1784_v26  ;;  %v990_v41 = vsel %vm165_vm0, %v988_v40, 0 }
 0xb19   :  { %v983_v42 = vsel %vm981_vm15, %v949_v13, %v947_v10  ;;  %v992_v43 = vshrl.u32 %v990_v41, 16  ;;  %v991_v44 = vand.u32 65535, %v990_v41 }
 0xb1a   :  { %v985_v45 = vadd.s32 512, %v983_v42 }
 0xb1b   :  { %v994_v46 = vcvt.s32.f32 %v992_v43  ;;  %v993_v47 = vcvt.s32.f32 %v991_v44 }
 0xb1c   :  { %vm987_vm3 = vcmp.lt.s32.totalorder %v1775_v28, %v985_v45 }
 0xb1d   :  { %997 = vadd.xlane.f32.xlu2 %v994_v46  ;;  %995 = vadd.xlane.f32.xlu1 %v993_v47  ;;  %v989_v48 = vsel %vm987_vm3, 1, %v1669_v2 }
 0xb1e   :  { %v1003_v49 = vsel %vm165_vm0, %v989_v48, 0 }
 0xb1f   :  { %v1005_v50 = vshrl.u32 %v1003_v49, 16  ;;  %v1004_v51 = vand.u32 65535, %v1003_v49 }
 0xb21   :  { %v1007_v52 = vcvt.s32.f32 %v1005_v50  ;;  %v1006_v53 = vcvt.s32.f32 %v1004_v51 }
 0xb23   :  { %1010 = vadd.xlane.f32.xlu0 %v1007_v52 }
 0xb25   :  { %1008 = vadd.xlane.f32.xlu2 %v1006_v53 }
 0xb90   :  { %v998_v54 = vpop.xlane.xlu2 %997  ;;  %v996_v55 = vpop.xlane.xlu1 %995 }
 0xb91   :  { %v1000_v56 = vcvt.f32.s32 %v998_v54  ;;  %v999_v58 = vcvt.f32.s32 %v996_v55 }
 0xb93   :  { %v1001_v57 = vshll.u32 %v1000_v56, 16 }
 0xb95   :  { %v1002_v59 = vadd.s32 %v1001_v57, %v999_v58 }
 0xb96   :  { %v1011_v60 = vpop.xlane.xlu0 %1010 }
 0xb97   :  { %vm1016_vm6 = vcmp.lt.s32.totalorder %v1002_v59, %v1781_v24  ;;  %v1013_v61 = vcvt.f32.s32 %v1011_v60 }
 0xb98   :  { %v1018_v62 = vsel %vm1016_vm6, %v984_v38, %v982_v34  ;;  %v1009_v63 = vpop.xlane.xlu2 %1008 }
 0xb99   :  { %v1014_v3 = vshll.u32 %v1013_v61, 16  ;;  %v1012_v5 = vcvt.f32.s32 %v1009_v63  ;;  %v1020_v6 = vadd.s32 256, %v1018_v62 }
 0xb9b   :  { %v1015_v7 = vadd.s32 %v1014_v3, %v1012_v5  ;;  %vm1022_vm7 = vcmp.lt.s32.totalorder %v1761_v14, %v1020_v6 }
 0xb9c   :  { %v1024_v8 = vsel %vm1022_vm7, 1, %v1669_v2 }
 0xb9d   :  { %vm1017_vm8 = vcmp.lt.s32.totalorder %v1015_v7, %v1784_v26  ;;  %v1026_v10 = vsel %vm165_vm0, %v1024_v8, 0 }
 0xb9e   :  { %v1019_v11 = vsel %vm1017_vm8, %v985_v45, %v983_v42  ;;  %v1028_v12 = vshrl.u32 %v1026_v10, 16  ;;  %v1027_v13 = vand.u32 65535, %v1026_v10 }
 0xb9f   :  { %v1021_v15 = vadd.s32 256, %v1019_v11 }
 0xba0   :  { %v1030_v16 = vcvt.s32.f32 %v1028_v12  ;;  %v1029_v17 = vcvt.s32.f32 %v1027_v13 }
 0xba1   :  { %vm1023_vm9 = vcmp.lt.s32.totalorder %v1775_v28, %v1021_v15 }
 0xba2   :  { %1033 = vadd.xlane.f32.xlu0 %v1030_v16  ;;  %1031 = vadd.xlane.f32.xlu2 %v1029_v17  ;;  %v1025_v18 = vsel %vm1023_vm9, 1, %v1669_v2 }
 0xba3   :  { %v1039_v19 = vsel %vm165_vm0, %v1025_v18, 0 }
 0xba4   :  { %v1041_v20 = vshrl.u32 %v1039_v19, 16  ;;  %v1040_v21 = vand.u32 65535, %v1039_v19 }
 0xba6   :  { %v1043_v22 = vcvt.s32.f32 %v1041_v20  ;;  %v1042_v23 = vcvt.s32.f32 %v1040_v21 }
 0xba8   :  { %1046 = vadd.xlane.f32.xlu1 %v1043_v22 }
 0xbaa   :  { %1044 = vadd.xlane.f32.xlu0 %v1042_v23 }
 0xc15   :  { %v1034_v25 = vpop.xlane.xlu0 %1033  ;;  %v1032_v27 = vpop.xlane.xlu2 %1031 }
 0xc16   :  { %v1036_v29 = vcvt.f32.s32 %v1034_v25  ;;  %v1035_v31 = vcvt.f32.s32 %v1032_v27 }
 0xc18   :  { %v1037_v30 = vshll.u32 %v1036_v29, 16 }
 0xc1a   :  { %v1038_v32 = vadd.s32 %v1037_v30, %v1035_v31 }
 0xc1b   :  { %v1047_v33 = vpop.xlane.xlu1 %1046 }
 0xc1c   :  { %vm1052_vm10 = vcmp.lt.s32.totalorder %v1038_v32, %v1781_v24  ;;  %v1049_v34 = vcvt.f32.s32 %v1047_v33 }
 0xc1d   :  { %v1054_v35 = vsel %vm1052_vm10, %v1020_v6, %v1018_v62  ;;  %v1045_v36 = vpop.xlane.xlu0 %1044 }
 0xc1e   :  { %v1050_v37 = vshll.u32 %v1049_v34, 16  ;;  %v1048_v38 = vcvt.f32.s32 %v1045_v36  ;;  %v1056_v39 = vadd.s32 128, %v1054_v35 }
 0xc20   :  { %v1051_v40 = vadd.s32 %v1050_v37, %v1048_v38  ;;  %vm1058_vm11 = vcmp.lt.s32.totalorder %v1761_v14, %v1056_v39 }
 0xc21   :  { %v1060_v41 = vsel %vm1058_vm11, 1, %v1669_v2 }
 0xc22   :  { %vm1053_vm12 = vcmp.lt.s32.totalorder %v1051_v40, %v1784_v26  ;;  %v1062_v42 = vsel %vm165_vm0, %v1060_v41, 0 }
 0xc23   :  { %v1055_v43 = vsel %vm1053_vm12, %v1021_v15, %v1019_v11  ;;  %v1064_v44 = vshrl.u32 %v1062_v42, 16  ;;  %v1063_v45 = vand.u32 65535, %v1062_v42 }
 0xc24   :  { %v1057_v46 = vadd.s32 128, %v1055_v43 }
 0xc25   :  { %v1066_v47 = vcvt.s32.f32 %v1064_v44  ;;  %v1065_v48 = vcvt.s32.f32 %v1063_v45 }
 0xc26   :  { %vm1059_vm13 = vcmp.lt.s32.totalorder %v1775_v28, %v1057_v46 }
 0xc27   :  { %1069 = vadd.xlane.f32.xlu1 %v1066_v47  ;;  %1067 = vadd.xlane.f32.xlu0 %v1065_v48  ;;  %v1061_v49 = vsel %vm1059_vm13, 1, %v1669_v2 }
 0xc28   :  { %v1075_v50 = vsel %vm165_vm0, %v1061_v49, 0 }
 0xc29   :  { %v1077_v51 = vshrl.u32 %v1075_v50, 16  ;;  %v1076_v52 = vand.u32 65535, %v1075_v50 }
 0xc2b   :  { %v1079_v53 = vcvt.s32.f32 %v1077_v51  ;;  %v1078_v54 = vcvt.s32.f32 %v1076_v52 }
 0xc2d   :  { %1082 = vadd.xlane.f32.xlu2 %v1079_v53 }
 0xc2f   :  { %1080 = vadd.xlane.f32.xlu1 %v1078_v54 }
 0xc9a   :  { %v1068_v55 = vpop.xlane.xlu0 %1067  ;;  %v1070_v56 = vpop.xlane.xlu1 %1069 }
 0xc9b   :  { %v1072_v57 = vcvt.f32.s32 %v1070_v56  ;;  %v1071_v58 = vcvt.f32.s32 %v1068_v55 }
 0xc9d   :  { %v1073_v59 = vshll.u32 %v1072_v57, 16 }
 0xc9f   :  { %v1074_v60 = vadd.s32 %v1073_v59, %v1071_v58 }
 0xca0   :  { %v1083_v61 = vpop.xlane.xlu2 %1082 }
 0xca1   :  { %vm1088_vm14 = vcmp.lt.s32.totalorder %v1074_v60, %v1781_v24  ;;  %v1085_v62 = vcvt.f32.s32 %v1083_v61 }
 0xca2   :  { %v1090_v63 = vsel %vm1088_vm14, %v1056_v39, %v1054_v35  ;;  %v1081_v3 = vpop.xlane.xlu1 %1080 }
 0xca3   :  { %v1086_v5 = vshll.u32 %v1085_v62, 16  ;;  %v1084_v6 = vcvt.f32.s32 %v1081_v3  ;;  %v1092_v7 = vadd.s32 64, %v1090_v63 }
 0xca5   :  { %v1087_v8 = vadd.s32 %v1086_v5, %v1084_v6  ;;  %vm1094_vm15 = vcmp.lt.s32.totalorder %v1761_v14, %v1092_v7 }
 0xca6   :  { %v1096_v10 = vsel %vm1094_vm15, 1, %v1669_v2 }
 0xca7   :  { %vm1089_vm3 = vcmp.lt.s32.totalorder %v1087_v8, %v1784_v26  ;;  %v1098_v11 = vsel %vm165_vm0, %v1096_v10, 0 }
 0xca8   :  { %v1091_v12 = vsel %vm1089_vm3, %v1057_v46, %v1055_v43  ;;  %v1100_v13 = vshrl.u32 %v1098_v11, 16  ;;  %v1099_v15 = vand.u32 65535, %v1098_v11 }
 0xca9   :  { %v1093_v16 = vadd.s32 64, %v1091_v12 }
 0xcaa   :  { %v1102_v17 = vcvt.s32.f32 %v1100_v13  ;;  %v1101_v18 = vcvt.s32.f32 %v1099_v15 }
 0xcab   :  { %vm1095_vm6 = vcmp.lt.s32.totalorder %v1775_v28, %v1093_v16 }
 0xcac   :  { %1105 = vadd.xlane.f32.xlu2 %v1102_v17  ;;  %1103 = vadd.xlane.f32.xlu1 %v1101_v18  ;;  %v1097_v19 = vsel %vm1095_vm6, 1, %v1669_v2 }
 0xcad   :  { %v1111_v20 = vsel %vm165_vm0, %v1097_v19, 0 }
 0xcae   :  { %v1113_v21 = vshrl.u32 %v1111_v20, 16  ;;  %v1112_v22 = vand.u32 65535, %v1111_v20 }
 0xcb0   :  { %v1115_v23 = vcvt.s32.f32 %v1113_v21  ;;  %v1114_v25 = vcvt.s32.f32 %v1112_v22 }
 0xcb2   :  { %1118 = vadd.xlane.f32.xlu0 %v1115_v23 }
 0xcb4   :  { %1116 = vadd.xlane.f32.xlu2 %v1114_v25 }
 0xd1f   :  { %v1106_v27 = vpop.xlane.xlu2 %1105  ;;  %v1104_v29 = vpop.xlane.xlu1 %1103 }
 0xd20   :  { %v1108_v30 = vcvt.f32.s32 %v1106_v27  ;;  %v1107_v32 = vcvt.f32.s32 %v1104_v29 }
 0xd22   :  { %v1109_v31 = vshll.u32 %v1108_v30, 16 }
 0xd24   :  { %v1110_v33 = vadd.s32 %v1109_v31, %v1107_v32 }
 0xd25   :  { %v1119_v34 = vpop.xlane.xlu0 %1118 }
 0xd26   :  { %vm1124_vm7 = vcmp.lt.s32.totalorder %v1110_v33, %v1781_v24  ;;  %v1121_v35 = vcvt.f32.s32 %v1119_v34 }
 0xd27   :  { %v1126_v36 = vsel %vm1124_vm7, %v1092_v7, %v1090_v63  ;;  %v1117_v37 = vpop.xlane.xlu2 %1116 }
 0xd28   :  { %v1122_v38 = vshll.u32 %v1121_v35, 16  ;;  %v1120_v39 = vcvt.f32.s32 %v1117_v37  ;;  %v1128_v40 = vadd.s32 32, %v1126_v36 }
 0xd2a   :  { %v1123_v41 = vadd.s32 %v1122_v38, %v1120_v39  ;;  %vm1130_vm8 = vcmp.lt.s32.totalorder %v1761_v14, %v1128_v40 }
 0xd2b   :  { %v1132_v42 = vsel %vm1130_vm8, 1, %v1669_v2 }
 0xd2c   :  { %vm1125_vm9 = vcmp.lt.s32.totalorder %v1123_v41, %v1784_v26  ;;  %v1134_v43 = vsel %vm165_vm0, %v1132_v42, 0 }
 0xd2d   :  { %v1127_v44 = vsel %vm1125_vm9, %v1093_v16, %v1091_v12  ;;  %v1136_v45 = vshrl.u32 %v1134_v43, 16  ;;  %v1135_v46 = vand.u32 65535, %v1134_v43 }
 0xd2e   :  { %v1129_v47 = vadd.s32 32, %v1127_v44 }
 0xd2f   :  { %v1138_v48 = vcvt.s32.f32 %v1136_v45  ;;  %v1137_v49 = vcvt.s32.f32 %v1135_v46 }
 0xd30   :  { %vm1131_vm10 = vcmp.lt.s32.totalorder %v1775_v28, %v1129_v47 }
 0xd31   :  { %1141 = vadd.xlane.f32.xlu0 %v1138_v48  ;;  %1139 = vadd.xlane.f32.xlu2 %v1137_v49  ;;  %v1133_v50 = vsel %vm1131_vm10, 1, %v1669_v2 }
 0xd32   :  { %v1147_v51 = vsel %vm165_vm0, %v1133_v50, 0 }
 0xd33   :  { %v1149_v52 = vshrl.u32 %v1147_v51, 16  ;;  %v1148_v53 = vand.u32 65535, %v1147_v51 }
 0xd35   :  { %v1151_v54 = vcvt.s32.f32 %v1149_v52  ;;  %v1150_v55 = vcvt.s32.f32 %v1148_v53 }
 0xd37   :  { %1154 = vadd.xlane.f32.xlu1 %v1151_v54 }
 0xd39   :  { %1152 = vadd.xlane.f32.xlu0 %v1150_v55 }
 0xda4   :  { %v1142_v56 = vpop.xlane.xlu0 %1141  ;;  %v1140_v57 = vpop.xlane.xlu2 %1139 }
 0xda5   :  { %v1144_v58 = vcvt.f32.s32 %v1142_v56  ;;  %v1143_v60 = vcvt.f32.s32 %v1140_v57 }
 0xda7   :  { %v1145_v59 = vshll.u32 %v1144_v58, 16 }
 0xda9   :  { %v1146_v61 = vadd.s32 %v1145_v59, %v1143_v60 }
 0xdaa   :  { %v1155_v62 = vpop.xlane.xlu1 %1154 }
 0xdab   :  { %vm1160_vm11 = vcmp.lt.s32.totalorder %v1146_v61, %v1781_v24  ;;  %v1157_v63 = vcvt.f32.s32 %v1155_v62 }
 0xdac   :  { %v1162_v3 = vsel %vm1160_vm11, %v1128_v40, %v1126_v36  ;;  %v1153_v5 = vpop.xlane.xlu0 %1152 }
 0xdad   :  { %v1158_v6 = vshll.u32 %v1157_v63, 16  ;;  %v1156_v7 = vcvt.f32.s32 %v1153_v5  ;;  %v1164_v8 = vadd.s32 16, %v1162_v3 }
 0xdaf   :  { %v1159_v10 = vadd.s32 %v1158_v6, %v1156_v7  ;;  %vm1166_vm12 = vcmp.lt.s32.totalorder %v1761_v14, %v1164_v8 }
 0xdb0   :  { %v1168_v11 = vsel %vm1166_vm12, 1, %v1669_v2 }
 0xdb1   :  { %vm1161_vm13 = vcmp.lt.s32.totalorder %v1159_v10, %v1784_v26  ;;  %v1170_v12 = vsel %vm165_vm0, %v1168_v11, 0 }
 0xdb2   :  { %v1163_v13 = vsel %vm1161_vm13, %v1129_v47, %v1127_v44  ;;  %v1172_v15 = vshrl.u32 %v1170_v12, 16  ;;  %v1171_v16 = vand.u32 65535, %v1170_v12 }
 0xdb3   :  { %v1165_v17 = vadd.s32 16, %v1163_v13 }
 0xdb4   :  { %v1174_v18 = vcvt.s32.f32 %v1172_v15  ;;  %v1173_v19 = vcvt.s32.f32 %v1171_v16 }
 0xdb5   :  { %vm1167_vm14 = vcmp.lt.s32.totalorder %v1775_v28, %v1165_v17 }
 0xdb6   :  { %1177 = vadd.xlane.f32.xlu1 %v1174_v18  ;;  %1175 = vadd.xlane.f32.xlu0 %v1173_v19  ;;  %v1169_v20 = vsel %vm1167_vm14, 1, %v1669_v2 }
 0xdb7   :  { %v1183_v21 = vsel %vm165_vm0, %v1169_v20, 0 }
 0xdb8   :  { %v1185_v22 = vshrl.u32 %v1183_v21, 16  ;;  %v1184_v23 = vand.u32 65535, %v1183_v21 }
 0xdba   :  { %v1187_v25 = vcvt.s32.f32 %v1185_v22  ;;  %v1186_v27 = vcvt.s32.f32 %v1184_v23 }
 0xdbc   :  { %1190 = vadd.xlane.f32.xlu2 %v1187_v25 }
 0xdbe   :  { %1188 = vadd.xlane.f32.xlu1 %v1186_v27 }
 0xe29   :  { %v1176_v29 = vpop.xlane.xlu0 %1175  ;;  %v1178_v30 = vpop.xlane.xlu1 %1177 }
 0xe2a   :  { %v1180_v31 = vcvt.f32.s32 %v1178_v30  ;;  %v1179_v32 = vcvt.f32.s32 %v1176_v29 }
 0xe2c   :  { %v1181_v33 = vshll.u32 %v1180_v31, 16 }
 0xe2e   :  { %v1182_v34 = vadd.s32 %v1181_v33, %v1179_v32 }
 0xe2f   :  { %v1191_v35 = vpop.xlane.xlu2 %1190 }
 0xe30   :  { %vm1196_vm15 = vcmp.lt.s32.totalorder %v1182_v34, %v1781_v24  ;;  %v1193_v36 = vcvt.f32.s32 %v1191_v35 }
 0xe31   :  { %v1198_v37 = vsel %vm1196_vm15, %v1164_v8, %v1162_v3  ;;  %v1189_v38 = vpop.xlane.xlu1 %1188 }
 0xe32   :  { %v1194_v39 = vshll.u32 %v1193_v36, 16  ;;  %v1192_v40 = vcvt.f32.s32 %v1189_v38  ;;  %v1200_v41 = vadd.s32 8, %v1198_v37 }
 0xe34   :  { %v1195_v42 = vadd.s32 %v1194_v39, %v1192_v40  ;;  %vm1202_vm3 = vcmp.lt.s32.totalorder %v1761_v14, %v1200_v41 }
 0xe35   :  { %v1204_v43 = vsel %vm1202_vm3, 1, %v1669_v2 }
 0xe36   :  { %vm1197_vm6 = vcmp.lt.s32.totalorder %v1195_v42, %v1784_v26  ;;  %v1206_v44 = vsel %vm165_vm0, %v1204_v43, 0 }
 0xe37   :  { %v1199_v45 = vsel %vm1197_vm6, %v1165_v17, %v1163_v13  ;;  %v1208_v46 = vshrl.u32 %v1206_v44, 16  ;;  %v1207_v47 = vand.u32 65535, %v1206_v44 }
 0xe38   :  { %v1201_v48 = vadd.s32 8, %v1199_v45 }
 0xe39   :  { %v1210_v49 = vcvt.s32.f32 %v1208_v46  ;;  %v1209_v50 = vcvt.s32.f32 %v1207_v47 }
 0xe3a   :  { %vm1203_vm7 = vcmp.lt.s32.totalorder %v1775_v28, %v1201_v48 }
 0xe3b   :  { %1213 = vadd.xlane.f32.xlu2 %v1210_v49  ;;  %1211 = vadd.xlane.f32.xlu1 %v1209_v50  ;;  %v1205_v51 = vsel %vm1203_vm7, 1, %v1669_v2 }
 0xe3c   :  { %v1219_v52 = vsel %vm165_vm0, %v1205_v51, 0 }
 0xe3d   :  { %v1221_v53 = vshrl.u32 %v1219_v52, 16  ;;  %v1220_v54 = vand.u32 65535, %v1219_v52 }
 0xe3f   :  { %v1223_v55 = vcvt.s32.f32 %v1221_v53  ;;  %v1222_v56 = vcvt.s32.f32 %v1220_v54 }
 0xe41   :  { %1226 = vadd.xlane.f32.xlu0 %v1223_v55 }
 0xe43   :  { %1224 = vadd.xlane.f32.xlu2 %v1222_v56 }
 0xeae   :  { %v1214_v57 = vpop.xlane.xlu2 %1213  ;;  %v1212_v58 = vpop.xlane.xlu1 %1211 }
 0xeaf   :  { %v1216_v59 = vcvt.f32.s32 %v1214_v57  ;;  %v1215_v61 = vcvt.f32.s32 %v1212_v58 }
 0xeb1   :  { %v1217_v60 = vshll.u32 %v1216_v59, 16 }
 0xeb3   :  { %v1218_v62 = vadd.s32 %v1217_v60, %v1215_v61 }
 0xeb4   :  { %v1227_v63 = vpop.xlane.xlu0 %1226 }
 0xeb5   :  { %vm1232_vm8 = vcmp.lt.s32.totalorder %v1218_v62, %v1781_v24  ;;  %v1229_v3 = vcvt.f32.s32 %v1227_v63 }
 0xeb6   :  { %v1234_v5 = vsel %vm1232_vm8, %v1200_v41, %v1198_v37  ;;  %v1225_v6 = vpop.xlane.xlu2 %1224 }
 0xeb7   :  { %v1230_v7 = vshll.u32 %v1229_v3, 16  ;;  %v1228_v8 = vcvt.f32.s32 %v1225_v6  ;;  %v1236_v10 = vadd.s32 4, %v1234_v5 }
 0xeb9   :  { %v1231_v11 = vadd.s32 %v1230_v7, %v1228_v8  ;;  %vm1238_vm9 = vcmp.lt.s32.totalorder %v1761_v14, %v1236_v10 }
 0xeba   :  { %v1240_v12 = vsel %vm1238_vm9, 1, %v1669_v2 }
 0xebb   :  { %vm1233_vm10 = vcmp.lt.s32.totalorder %v1231_v11, %v1784_v26  ;;  %v1242_v13 = vsel %vm165_vm0, %v1240_v12, 0 }
 0xebc   :  { %v1235_v15 = vsel %vm1233_vm10, %v1201_v48, %v1199_v45  ;;  %v1244_v16 = vshrl.u32 %v1242_v13, 16  ;;  %v1243_v17 = vand.u32 65535, %v1242_v13 }
 0xebd   :  { %v1237_v18 = vadd.s32 4, %v1235_v15 }
 0xebe   :  { %v1246_v19 = vcvt.s32.f32 %v1244_v16  ;;  %v1245_v20 = vcvt.s32.f32 %v1243_v17 }
 0xebf   :  { %vm1239_vm11 = vcmp.lt.s32.totalorder %v1775_v28, %v1237_v18 }
 0xec0   :  { %1249 = vadd.xlane.f32.xlu0 %v1246_v19  ;;  %1247 = vadd.xlane.f32.xlu2 %v1245_v20  ;;  %v1241_v21 = vsel %vm1239_vm11, 1, %v1669_v2  ;;  %vm124_vm11 = vcmask 1043456  }
 0xec1   :  { %v1255_v22 = vsel %vm165_vm0, %v1241_v21, 0 }
 0xec2   :  { %v1257_v23 = vshrl.u32 %v1255_v22, 16  ;;  %v1256_v25 = vand.u32 65535, %v1255_v22 }
 0xec4   :  { %v1259_v27 = vcvt.s32.f32 %v1257_v23  ;;  %v1258_v29 = vcvt.s32.f32 %v1256_v25 }
 0xec6   :  { %1262 = vadd.xlane.f32.xlu1 %v1259_v27 }
 0xec8   :  { %1260 = vadd.xlane.f32.xlu0 %v1258_v29 }
 0xf33   :  { %v1250_v30 = vpop.xlane.xlu0 %1249  ;;  %v1248_v31 = vpop.xlane.xlu2 %1247 }
 0xf34   :  { %v1252_v32 = vcvt.f32.s32 %v1250_v30  ;;  %v1251_v34 = vcvt.f32.s32 %v1248_v31  ;;  %v137_v31 = vld [vmem:[#allocation8] sm:$0x1] }
 0xf36   :  { %v1253_v33 = vshll.u32 %v1252_v32, 16  ;;  %v139_v32 = vld [vmem:[#allocation8 + $0x1] sm:$0x1] }
 0xf38   :  { %v1254_v35 = vadd.s32 %v1253_v33, %v1251_v34  ;;  %v141_v33 = vsub.f32 %v137_v31, %v139_v32  ;;  %v138_v34 = vld [vmem:[#allocation8 + $0x2] sm:$0x1] }
 0xf39   :  { %v1263_v36 = vpop.xlane.xlu1 %1262 }
 0xf3a   :  { %vm1268_vm12 = vcmp.lt.s32.totalorder %v1254_v35, %v1781_v24  ;;  %v1265_v37 = vcvt.f32.s32 %v1263_v36  ;;  %v140_v35 = vld [vmem:[#allocation8 + $0x3] sm:$0x1]  ;;  %v143_v36 = vsub.f32 0.0, %v141_v33 }
 0xf3b   :  { %v1270_v38 = vsel %vm1268_vm12, %v1236_v10, %v1234_v5  ;;  %v1261_v39 = vpop.xlane.xlu0 %1260 }
 0xf3c   :  { %v1266_v40 = vshll.u32 %v1265_v37, 16  ;;  %v1264_v41 = vcvt.f32.s32 %v1261_v39  ;;  %v1272_v42 = vadd.s32 2, %v1270_v38  ;;  %v142_v37 = vsub.f32 %v138_v34, %v140_v35 }
 0xf3e   :  { %v1267_v43 = vadd.s32 %v1266_v40, %v1264_v41  ;;  %vm1274_vm13 = vcmp.lt.s32.totalorder %v1761_v14, %v1272_v42  ;;  %v98_v40 = vld [vmem:[#allocation5] sm:$0xf]  ;;  %v99_v41 = vld [vmem:[#allocation5 + $0x4] sm:$0xf] }
 0xf3f   :  { %v1276_v44 = vsel %vm1274_vm13, 1, %v1669_v2 }
 0xf40   :  { %vm1269_vm14 = vcmp.lt.s32.totalorder %v1267_v43, %v1784_v26  ;;  %v1278_v45 = vsel %vm165_vm0, %v1276_v44, 0  ;;  %v101_v43 = vld [vmem:[#allocation2 + $0x4] sm:$0xf] }
 0xf41   :  { %v1271_v46 = vsel %vm1269_vm14, %v1237_v18, %v1235_v15  ;;  %v1280_v47 = vshrl.u32 %v1278_v45, 16  ;;  %v1279_v48 = vand.u32 65535, %v1278_v45 }
 0xf42   :  { %v1273_v49 = vadd.s32 2, %v1271_v46 }
 0xf43   :  { %v1282_v50 = vcvt.s32.f32 %v1280_v47  ;;  %v1281_v51 = vcvt.s32.f32 %v1279_v48 }
 0xf44   :  { %vm1275_vm15 = vcmp.lt.s32.totalorder %v1775_v28, %v1273_v49 }
 0xf45   :  { %1285 = vadd.xlane.f32.xlu1 %v1282_v50  ;;  %1283 = vadd.xlane.f32.xlu0 %v1281_v51  ;;  %v1277_v52 = vsel %vm1275_vm15, 1, %v1669_v2  ;;  %vm1348_vm15 = vcmp.gt.s32.totalorder %v1781_v24, 0 }
 0xf46   :  { %v1291_v53 = vsel %vm165_vm0, %v1277_v52, 0 }
 0xf47   :  { %v1293_v54 = vshrl.u32 %v1291_v53, 16  ;;  %v1292_v55 = vand.u32 65535, %v1291_v53  ;;  %v1671_v53 = vmov 0.0  }
 0xf49   :  { %v1295_v56 = vcvt.s32.f32 %v1293_v54  ;;  %v1294_v57 = vcvt.s32.f32 %v1292_v55  ;;  %v1445_v54 = vsel %vm90_vm1, 1.0, %v1671_v53  ;;  %v1446_v55 = vsel %vm91_vm2, 1.0, %v1671_v53 }
 0xf4b   :  { %1298 = vadd.xlane.f32.xlu2 %v1295_v56 }
 0xf4d   :  { %1296 = vadd.xlane.f32.xlu1 %v1294_v57 }
 0xfb8   :  { %v1284_v58 = vpop.xlane.xlu0 %1283  ;;  %v1286_v59 = vpop.xlane.xlu1 %1285 }
 0xfb9   :  { %v1288_v60 = vcvt.f32.s32 %v1286_v59  ;;  %v1287_v61 = vcvt.f32.s32 %v1284_v58 }
 0xfbb   :  { %v1289_v62 = vshll.u32 %v1288_v60, 16 }
 0xfbd   :  { %v1290_v63 = vadd.s32 %v1289_v62, %v1287_v61  ;;  %v118_v61 = vperm.slane %v1445_v54, 0  ;;  %v119_v62 = vperm.slane %v1446_v55, 0 }
 0xfbe   :  { %v1299_v3 = vpop.xlane.xlu2 %1298 }
 0xfbf   :  { %vm1304_vm3 = vcmp.lt.s32.totalorder %v1290_v63, %v1781_v24  ;;  %v1301_v5 = vcvt.f32.s32 %v1299_v3 }
 0xfc0   :  { %v2020_v6 = vsel %vm1304_vm3, %v1272_v42, %v1270_v38  ;;  %v1297_v7 = vpop.xlane.xlu1 %1296  ;;  %v2041_v38 = vsel %vm90_vm1, %v141_v33, %v143_v36  ;;  %v100_v42 = vld [vmem:[#allocation2] sm:$0xf] }
 0xfc1   :  { %v1302_v8 = vshll.u32 %v1301_v5, 16  ;;  %v1300_v10 = vcvt.f32.s32 %v1297_v7  ;;  %v2023_v11 = vadd.s32 1, %v2020_v6  ;;  %v149_v39 = vand.u32 2147483647, %v2041_v38 }
 0xfc2   :  { %v102_v44 = vsub.f32 %v98_v40, %v100_v42  ;;  %v147_v42 = vmax.f32 %v2041_v38, 0.0 }
 0xfc3   :  { %v1303_v12 = vadd.s32 %v1302_v8, %v1300_v10  ;;  %vm1310_vm6 = vcmp.lt.s32.totalorder %v1761_v14, %v2023_v11  ;;  %v1381_v8 = vsel %vm165_vm0, %v1445_v54, 0.0  ;;  %v1382_v10 = vsel %vm165_vm0, %v1446_v55, 0.0 }
 0xfc4   :  { %v1312_v13 = vsel %vm1310_vm6, 1, %v1669_v2  ;;  %v104_v47 = vand.u32 2147483647, %v102_v44  ;;  %v108_v48 = vmul.f32 0.5, %v102_v44 }
 0xfc5   :  { %vm1305_vm7 = vcmp.lt.s32.totalorder %v1303_v12, %v1784_v26  ;;  %v1314_v15 = vsel %vm165_vm0, %v1312_v13, 0 }
 0xfc6   :  { %v2030_v16 = vsel %vm1305_vm7, %v1273_v49, %v1271_v46  ;;  %v1316_v17 = vshrl.u32 %v1314_v15, 16  ;;  %v1315_v18 = vand.u32 65535, %v1314_v15  ;;  %v103_v46 = vsub.f32 %v99_v41, %v101_v43 }
 0xfc7   :  { %v2033_v19 = vadd.s32 1, %v2030_v16  ;;  %v151_v49 = vsub.f32 0.0, %v149_v39  ;;  %v110_v56 = vmul.f32 %v108_v48, %v102_v44  ;;  %v1447_v57 = vadd.f32 -0.5, %v104_v47 }
 0xfc8   :  { %v1318_v20 = vcvt.s32.f32 %v1316_v17  ;;  %v1317_v21 = vcvt.s32.f32 %v1315_v18  ;;  %v105_v50 = vand.u32 2147483647, %v103_v46  ;;  %v109_v51 = vmul.f32 0.5, %v103_v46 }
 0xfc9   :  { %vm1311_vm8 = vcmp.lt.s32.totalorder %v1775_v28, %v2033_v19  ;;  %vm106_vm9 = vcmp.lt.f32.partialorder %v104_v47, 1.0  ;;  %v153_v12 = vmul.f32 1.442695, %v151_v49  ;;  %v1383_v17 = vadd.f32 %v1382_v10, %v1381_v8 }
 0xfca   :  { %1321 = vadd.xlane.f32.xlu2 %v1318_v20  ;;  %1319 = vadd.xlane.f32.xlu1 %v1317_v21  ;;  %v1313_v22 = vsel %vm1311_vm8, 1, %v1669_v2  ;;  %v144_v2 = vsub.f32 0.0, %v142_v37  ;;  %vm107_vm10 = vcmp.lt.f32.partialorder %v105_v50, 1.0  ;;  %v111_v58 = vmul.f32 %v109_v51, %v103_v46 }
 0xfcb   :  { %v1327_v23 = vsel %vm165_vm0, %v1313_v22, 0  ;;  %v1448_v59 = vadd.f32 -0.5, %v105_v50  ;;  %v114_v60 = vsel %vm106_vm9, %v110_v56, %v1447_v57  ;;  %1473 = vpow2.f32 %v153_v12 }
 0xfcc   :  { %v1329_v25 = vshrl.u32 %v1327_v23, 16  ;;  %v1328_v27 = vand.u32 65535, %v1327_v23  ;;  %v2046_v45 = vsel %vm91_vm2, %v142_v37, %v144_v2  ;;  %v122_v5 = vmul.f32 %v118_v61, %v114_v60 }
 0xfcd   :  { %v150_v52 = vand.u32 2147483647, %v2046_v45  ;;  %v115_v63 = vsel %vm107_vm10, %v111_v58, %v1448_v59  ;;  %v148_v46 = vmax.f32 %v2046_v45, 0.0  ;;  %vm1349_vm9 = vcmp.gt.s32.totalorder %v1784_v26, 0 }
 0xfce   :  { %v1331_v29 = vcvt.s32.f32 %v1329_v25  ;;  %v1330_v30 = vcvt.s32.f32 %v1328_v27  ;;  %v123_v7 = vmul.f32 %v119_v62, %v115_v63  ;;  %v125_v13 = vsel %vm124_vm11, %v122_v5, 0.0 }
 0xfcf   :  { %v152_v3 = vsub.f32 0.0, %v150_v52 }
 0xfd0   :  { %1334 = vadd.xlane.f32.xlu0 %v1331_v29  ;;  %v126_v15 = vsel %vm124_vm11, %v123_v7, 0.0 }
 0xfd1   :  { %v127_v18 = vadd.f32 %v126_v15, %v125_v13  ;;  %v155_v20 = vmul.f32 1.442695, %v152_v3  ;;  %v1474_v21 = vpop.eup %1473 }
 0xfd2   :  { %1332 = vadd.xlane.f32.xlu2 %v1330_v30  ;;  %v157_v23 = vadd.f32 1.0, %v1474_v21 }
 0xfd3   :  { %1475 = vpow2.f32 %v155_v20 }
 0xfd4   :  { %1477 = vlog2.f32 %v157_v23 }
 0xfd8   :  { %128 = vadd.xlane.f32.xlu0 %v127_v18 }
 0xfd9   :  { %v1476_v22 = vpop.eup %1475 }
 0xfda   :  { %1384 = vadd.xlane.f32.xlu2 %v1383_v17  ;;  %v158_v25 = vadd.f32 1.0, %v1476_v22  ;;  %v1478_v35 = vpop.eup %1477 }
 0xfdb   :  { %v160_v43 = vmul.f32 0.6931472, %v1478_v35 }
 0xfdc   :  { %1479 = vlog2.f32 %v158_v25 }
 0xfe2   :  { %v1480_v39 = vpop.eup %1479 }
 0xfe3   :  { %v162_v47 = vmul.f32 0.6931472, %v1480_v39 }
0x103d   :  { %v1322_v27 = vpop.xlane.xlu2 %1321  ;;  %v1320_v29 = vpop.xlane.xlu1 %1319 }
0x103e   :  { %v1324_v30 = vcvt.f32.s32 %v1322_v27  ;;  %v1323_v32 = vcvt.f32.s32 %v1320_v29 }
0x1040   :  { %v1325_v31 = vshll.u32 %v1324_v30, 16 }
0x1042   :  { %v1326_v33 = vadd.s32 %v1325_v31, %v1323_v32 }
0x1043   :  { %v1335_v34 = vpop.xlane.xlu0 %1334 }
0x1044   :  { %vm1340_vm12 = vcmp.lt.s32.totalorder %v1326_v33, %v1781_v24  ;;  %v1337_v36 = vcvt.f32.s32 %v1335_v34 }
0x1045   :  { %v1342_v37 = vsel %vm1340_vm12, %v2023_v11, %v2020_v6  ;;  %v1333_v2 = vpop.xlane.xlu2 %1332  ;;  %v163_v6 = vadd.f32 %v160_v43, %v147_v42  ;;  %v164_v11 = vadd.f32 %v162_v47, %v148_v46 }
0x1046   :  { %vm1344_vm13 = vcmp.le.s32.totalorder %v1761_v14, %v1342_v37  ;;  %v1338_v40 = vshll.u32 %v1337_v36, 16  ;;  %v1336_v41 = vcvt.f32.s32 %v1333_v2 }
0x1047   :  { %vm1346_vm14 = vmand %vm1738_vm4, %vm1344_vm13 }
0x1048   :  { %v1339_v44 = vadd.s32 %v1338_v40, %v1336_v41  ;;  %vm1354_vm3 = vmand %vm1346_vm14, %vm1348_vm15 }
0x1049   :  { %vm1356_vm6 = vmor %vm90_vm1, %vm1354_vm3 }
0x104a   :  { %vm1341_vm7 = vcmp.lt.s32.totalorder %v1339_v44, %v1784_v26  ;;  %v1449_v4 = vsel %vm1356_vm6, 1.0, %v1671_v53 }
0x104b   :  { %v1343_v14 = vsel %vm1341_vm7, %v2033_v19, %v2030_v16  ;;  %v1362_v0 = vmul.f32 %v1449_v4, %v163_v6  ;;  %v129_v45 = vpop.xlane.xlu0 %128 }
0x104c   :  { %vm1345_vm8 = vcmp.le.s32.totalorder %v1775_v28, %v1343_v14  ;;  %v130_v48 = vrot.slane %v129_v45, 4 }
0x104d   :  { %vm1347_vm4 = vmand %vm1754_vm5, %vm1345_vm8  ;;  %v1364_v16 = vsel %vm165_vm0, %v1362_v0, 0.0  ;;  %v1385_v1 = vpop.xlane.xlu2 %1384 }
0x104e   :  { %vm1355_vm10 = vmand %vm1347_vm4, %vm1349_vm9  ;;  %v131_v9 = vadd.f32 %v130_v48, %v129_v45  ;;  %v1386_v52 = vrot.slane %v1385_v1, 4 }
0x104f   :  { %vm1357_vm1 = vmor %vm91_vm2, %vm1355_vm10 }
0x1050   :  { %v1450_v24 = vsel %vm1357_vm1, 1.0, %v1671_v53  ;;  %v132_v49 = vrot.slane %v131_v9, 2  ;;  %v1387_v54 = vadd.f32 %v1386_v52, %v1385_v1 }
0x1051   :  { %v1363_v38 = vmul.f32 %v1450_v24, %v164_v11 }
0x1052   :  { %v133_v50 = vadd.f32 %v132_v49, %v131_v9  ;;  %v1388_v55 = vrot.slane %v1387_v54, 2 }
0x1053   :  { %v1365_v28 = vsel %vm165_vm0, %v1363_v38, 0.0  ;;  %vm1377_vm0 = vcmask 0  }
0x1054   :  { %v1366_v19 = vadd.f32 %v1365_v28, %v1364_v16  ;;  %v134_v26 = vrot.slane %v133_v50, 1  ;;  %v1389_v58 = vadd.f32 %v1388_v55, %v1387_v54 }
0x1056   :  { %1367 = vadd.xlane.f32.xlu1 %v1366_v19  ;;  %v135_v51 = vadd.f32 %v134_v26, %v133_v50  ;;  %v1390_v61 = vrot.slane %v1389_v58, 1 }
0x1058   :  { %1451 = vpush %v135_v51  ;;  %v1391_v3 = vadd.f32 %v1390_v61, %v1389_v58 }
0x1089   :  { %s1452_s8 = spop %1451 }
0x108a   :  { %v1376_v5 = vstv %s1452_s8 }
0x108b   :  { %1378 = vst.msk [vmem:[#allocation10] sm:$0x1] %vm1377_vm0, %v1376_v5 }
0x108c   :  { %1405 = dma.vmem_to_hbm [thread:$0]  %s1401_s30, 16, %s1403_s28, [#allocation4]  }
0x10c9   :  { %v1368_v53 = vpop.xlane.xlu1 %1367 }
0x10ca   :  { %v1369_v56 = vrot.slane %v1368_v53, 4 }
0x10cc   :  { %v1370_v57 = vadd.f32 %v1369_v56, %v1368_v53 }
0x10ce   :  { %v1371_v59 = vrot.slane %v1370_v57, 2 }
0x10d0   :  { %v1372_v60 = vadd.f32 %v1371_v59, %v1370_v57 }
0x10d2   :  { %v1373_v62 = vrot.slane %v1372_v60, 1 }
0x10d4   :  { %v1374_v63 = vadd.f32 %v1373_v62, %v1372_v60 }
0x10d6   :  { %1453 = vpush %v1374_v63 }
0x10d7   :  { %1455 = vpush %v1391_v3 }
0x1107   :  { %s1454_s17 = spop %1453 }
0x1108   :  { %v1379_v7 = vstv %s1454_s17  ;;  %s1456_s18 = spop %1455 }
0x1109   :  { %1380 = vst.msk [vmem:[#allocation11] sm:$0x1] %vm1377_vm0, %v1379_v7  ;;  %v1393_v8 = vstv %s1456_s18 }
0x110a   :  { %1394 = vst.msk [vmem:[#allocation13] sm:$0x1] %vm1377_vm0, %v1393_v8  ;;  %1416 = dma.vmem_to_hbm [thread:$0]  %s1412_s10, 16, %s1414_s13, [#allocation12]  }
0x110b   :  { %1427 = dma.vmem_to_hbm [thread:$0]  %s1423_s15, 16, %s1425_s16, [#allocation12]  }
0x110c   :  { %1655 = dma.done.wait [#allocation4], 16  }
0x110d   :  { %1656 = vsyncadd [#allocation4], 4294967280 }
0x110e   :  { %1657 = dma.done.wait [#allocation12], 32  }
0x110f   :  { %1658 = vsyncadd [#allocation12], 4294967264 }
0x1110   :  { %1440 = vsyncpa [#allocation3], 1 }
0x1111   :  { %1441 = vsyncpa [#allocation6], 1 }
0x1112   :  { %1442 = vsyncpa [#allocation9], 1 }
0x1113   :  { %1443 = vsyncpa [#allocation4], 1 }
0x1114   :  { %1444 = vsyncpa [#allocation12], 1 }

</bundles_post_ra>
